<compile_context>
chip_gen: v5e
topology: v5e:2x2
jax: 0.10.0
libtpu: 0.0.40
codegen_flags: <defaults>
</compile_context>

<pallas_src>
import jax
import jax.numpy as jnp
from jax.experimental import pallas as pl
from jax.experimental.pallas import tpu as pltpu


# ---------------------------------------------------------------------------
# Fused kernel: all LSTM layers + FC head, one launch.
# ---------------------------------------------------------------------------
def make_fused_lstm_fc_kernel(num_layers, B, T, H):
    G = 4 * H

    def kernel(*refs):
        # refs = [x_flat, (wih_t, whh_t, b) * num_layers, wfc_t, bfc, out,
        #         gx_scratch, h_scratch]
        x_ref = refs[0]                                   # (T*B, D), row t*B + b
        layer_refs = refs[1:1 + 3 * num_layers]
        wf_ref = refs[1 + 3 * num_layers]                 # (H, O)
        bf_ref = refs[2 + 3 * num_layers]                 # (1, O)
        out_ref = refs[3 + 3 * num_layers]                # (B, O)
        gx_scr = refs[4 + 3 * num_layers]                 # VMEM (T*B, 4H) f32
        h_scr = refs[5 + 3 * num_layers]                  # VMEM (T*B, H)  f32

        # ---- Layer-0 input projections: ONE (T*B, D) @ (D, 4H) matmul -------
        x_flat = x_ref[...].astype(jnp.float32)           # (T*B, D)
        wih0 = layer_refs[0][...]                         # (D, 4H)
        b0 = layer_refs[2][...]                           # (1, 4H)
        gx_scr[...] = (
            jnp.dot(x_flat, wih0, preferred_element_type=jnp.float32) + b0
        )

        h = None
        for layer in range(num_layers):
            whh = layer_refs[3 * layer + 1][...]          # (H, 4H)
            has_next = layer + 1 < num_layers

            h = None
            c = None
            for t in range(T):                            # statically unrolled
                g_in = gx_scr[pl.ds(t * B, B), :]         # (B, 4H)
                if t == 0:
                    gates = g_in                          # h == 0: skip h @ Whh
                else:
                    gates = g_in + jnp.dot(
                        h, whh, preferred_element_type=jnp.float32)

                # Two full-lane EUP passes over the whole (B, 4H) gates value,
                # then cheap lane slices (PyTorch gate order i, f, g, o).
                sg = jax.nn.sigmoid(gates)
                tg = jnp.tanh(gates)
                i_g = sg[:, 0 * H:1 * H]
                f_g = sg[:, 1 * H:2 * H]
                g_g = tg[:, 2 * H:3 * H]
                o_g = sg[:, 3 * H:4 * H]

                if t == 0:
                    c = i_g * g_g                         # c == 0: skip f * c
                else:
                    c = f_g * c + i_g * g_g
                h = o_g * jnp.tanh(c)

                if has_next:
                    h_scr[pl.ds(t * B, B), :] = h

            if has_next:
                # Next layer's input projections, batched into ONE matmul after
                # the recurrence (off the serial per-timestep chain).
                wih_next = layer_refs[3 * (layer + 1)][...]       # (H, 4H)
                b_next = layer_refs[3 * (layer + 1) + 2][...]     # (1, 4H)
                gx_scr[...] = (
                    jnp.dot(h_scr[...], wih_next,
                            preferred_element_type=jnp.float32) + b_next
                )

        # FC head on the top layer's last hidden state (== lstm_out[:, -1, :]).
        out = jnp.dot(h, wf_ref[...],
                      preferred_element_type=jnp.float32) + bf_ref[...]
        out_ref[...] = out.astype(out_ref.dtype)

    return kernel


def _zero_map(ndim):
    return lambda i: (0,) * ndim


def model_forward(params, x_enc, x_mark_enc=None, x_dec=None, x_mark_dec=None):
    """Mirrors Model.forward: out = fc(lstm(x_enc)[:, -1, :])."""
    B, T, D = x_enc.shape
    num_layers = len(params["lstm"])
    H = params["lstm"][0]["whh_t"].shape[0]
    O = params["fc"]["w_t"].shape[1]

    # Tiny wrapper-side reorder (256 B for the test shape): row t*B + b of
    # x_flat is x_enc[b, t, :], so per-timestep gate inputs are contiguous
    # sublane slabs inside the kernel.
    x_flat = jnp.transpose(x_enc, (1, 0, 2)).reshape(T * B, D)

    inputs = [x_flat]
    in_specs = [pl.BlockSpec((T * B, D), _zero_map(2))]
    for layer in params["lstm"]:
        for name in ("wih_t", "whh_t", "b"):
            arr = layer[name]
            inputs.append(arr)
            in_specs.append(pl.BlockSpec(arr.shape, _zero_map(arr.ndim)))
    for name in ("w_t", "b"):
        arr = params["fc"][name]
        inputs.append(arr)
        in_specs.append(pl.BlockSpec(arr.shape, _zero_map(arr.ndim)))

    kernel = make_fused_lstm_fc_kernel(num_layers, B, T, H)
    return pl.pallas_call(
        kernel,
        out_shape=jax.ShapeDtypeStruct((B, O), x_enc.dtype),
        grid_spec=pltpu.PrefetchScalarGridSpec(
            num_scalar_prefetch=0,
            grid=(1,),
            in_specs=in_specs,
            out_specs=pl.BlockSpec((B, O), _zero_map(2)),
            scratch_shapes=[
                pltpu.VMEM((T * B, 4 * H), jnp.float32),   # gate pre-activations
                pltpu.VMEM((T * B, H), jnp.float32),       # per-layer hidden states
            ],
        ),
        compiler_params=pltpu.CompilerParams(
            dimension_semantics=("arbitrary",)),
    )(*inputs)


# ---------------------------------------------------------------------------
# Params (PyTorch nn.LSTM / nn.Linear shapes, deterministic synthetic init).
# ---------------------------------------------------------------------------
def init_params(key, in_dim, hidden_dim, num_classes, num_layers):
    k = 1.0 / float(hidden_dim) ** 0.5
    params = {"lstm": []}
    for layer_idx in range(num_layers):
        d = in_dim if layer_idx == 0 else hidden_dim
        key, k1, k2, k3, k4 = jax.random.split(key, 5)
        w_ih = jax.random.uniform(k1, (4 * hidden_dim, d), jnp.float32, -k, k)
        w_hh = jax.random.uniform(k2, (4 * hidden_dim, hidden_dim), jnp.float32, -k, k)
        b_ih = jax.random.uniform(k3, (4 * hidden_dim,), jnp.float32, -k, k)
        b_hh = jax.random.uniform(k4, (4 * hidden_dim,), jnp.float32, -k, k)
        params["lstm"].append({
            "wih_t": w_ih.T,                    # (D, 4H): kernel does x @ W_ih^T
            "whh_t": w_hh.T,                    # (H, 4H)
            "b": (b_ih + b_hh).reshape(1, -1),  # (1, 4H)
        })
    key, k1, k2 = jax.random.split(key, 3)
    w_fc = jax.random.uniform(k1, (num_classes, hidden_dim), jnp.float32, -k, k)
    b_fc = jax.random.uniform(k2, (num_classes,), jnp.float32, -k, k)
    params["fc"] = {"w_t": w_fc.T, "b": b_fc.reshape(1, -1)}
    return params


# Pure-JAX reference (same math, lax.scan) for a sanity check.
def reference_forward(params, x_enc):
    x = x_enc
    B = x.shape[0]
    for layer in params["lstm"]:
        wih, whh, b = layer["wih_t"], layer["whh_t"], layer["b"]
        H = whh.shape[0]

        def step(carry, x_t):
            h, c = carry
            gates = x_t @ wih + h @ whh + b
            i = jax.nn.sigmoid(gates[:, 0 * H:1 * H])
            f = jax.nn.sigmoid(gates[:, 1 * H:2 * H])
            g = jnp.tanh(gates[:, 2 * H:3 * H])
            o = jax.nn.sigmoid(gates[:, 3 * H:4 * H])
            c = f * c + i * g
            h = o * jnp.tanh(c)
            return (h, c), h

        init = (jnp.zeros((B, H), jnp.float32), jnp.zeros((B, H), jnp.float32))
        _, hs = jax.lax.scan(step, init, jnp.transpose(x, (1, 0, 2)))
        x = jnp.transpose(hs, (1, 0, 2))
    return x[:, -1, :] @ params["fc"]["w_t"] + params["fc"]["b"]


if __name__ == "__main__":
    # configs: in_dim=4, hidden_dim=32, num_classes=5, num_layers=2
    B, T, IN_DIM, HIDDEN, NUM_CLASSES, NUM_LAYERS = 2, 8, 4, 32, 5, 2

    key = jax.random.PRNGKey(0)
    key, kx, km, kp = jax.random.split(key, 4)
    x_enc = jax.random.normal(kx, (B, T, IN_DIM), jnp.float32)
    x_mark_enc = jax.random.normal(km, (B, T, IN_DIM), jnp.float32)  # unused, like the module

    params = init_params(kp, IN_DIM, HIDDEN, NUM_CLASSES, NUM_LAYERS)

    out = jax.jit(model_forward)(params, x_enc, x_mark_enc)
    jax.block_until_ready(out)
    assert out.shape == (B, NUM_CLASSES), out.shape

    ref = reference_forward(params, x_enc)
    assert jnp.allclose(out, ref, rtol=1e-3, atol=1e-3), (out, ref)

    print("KERNEL_OK")
</pallas_src>

<mosaic_0001>
module attributes {stable_mosaic.version = 11 : i64} {
  func.func @kernel(%arg0: i32, %arg1: memref<16x4xf32, #tpu.memory_space<vmem>>, %arg2: memref<4x128xf32, #tpu.memory_space<vmem>>, %arg3: memref<32x128xf32, #tpu.memory_space<vmem>>, %arg4: memref<1x128xf32, #tpu.memory_space<vmem>>, %arg5: memref<32x128xf32, #tpu.memory_space<vmem>>, %arg6: memref<32x128xf32, #tpu.memory_space<vmem>>, %arg7: memref<1x128xf32, #tpu.memory_space<vmem>>, %arg8: memref<32x5xf32, #tpu.memory_space<vmem>>, %arg9: memref<1x5xf32, #tpu.memory_space<vmem>>, %arg10: memref<2x5xf32, #tpu.memory_space<vmem>>, %arg11: memref<16x128xf32, #tpu.memory_space<vmem>>, %arg12: memref<16x32xf32, #tpu.memory_space<vmem>>) attributes {dimension_semantics = [#tpu.dimension_semantics<arbitrary>], iteration_bounds = array<i64: 1>, scalar_prefetch = 0 : i64, scratch_operands = 2 : i64, tpu.core_type = #tpu.core_type<tc>, window_params = [{pipeline_mode = #tpu.pipeline_mode<synchronous>, transform_indices = @transform_0, window_bounds = array<i64: 16, 4>}, {pipeline_mode = #tpu.pipeline_mode<synchronous>, transform_indices = @transform_1, window_bounds = array<i64: 4, 128>}, {pipeline_mode = #tpu.pipeline_mode<synchronous>, transform_indices = @transform_2, window_bounds = array<i64: 32, 128>}, {pipeline_mode = #tpu.pipeline_mode<synchronous>, transform_indices = @transform_3, window_bounds = array<i64: 1, 128>}, {pipeline_mode = #tpu.pipeline_mode<synchronous>, transform_indices = @transform_4, window_bounds = array<i64: 32, 128>}, {pipeline_mode = #tpu.pipeline_mode<synchronous>, transform_indices = @transform_5, window_bounds = array<i64: 32, 128>}, {pipeline_mode = #tpu.pipeline_mode<synchronous>, transform_indices = @transform_6, window_bounds = array<i64: 1, 128>}, {pipeline_mode = #tpu.pipeline_mode<synchronous>, transform_indices = @transform_7, window_bounds = array<i64: 32, 5>}, {pipeline_mode = #tpu.pipeline_mode<synchronous>, transform_indices = @transform_8, window_bounds = array<i64: 1, 5>}, {pipeline_mode = #tpu.pipeline_mode<synchronous>, transform_indices = @transform_9, window_bounds = array<i64: 2, 5>}]} {
    %c0 = arith.constant 0 : index
    %c0_0 = arith.constant 0 : index
    %0 = vector.load %arg1[%c0, %c0_0] : memref<16x4xf32, #tpu.memory_space<vmem>>, vector<16x4xf32>
    %c0_1 = arith.constant 0 : index
    %c0_2 = arith.constant 0 : index
    %1 = vector.load %arg2[%c0_1, %c0_2] : memref<4x128xf32, #tpu.memory_space<vmem>>, vector<4x128xf32>
    %c0_3 = arith.constant 0 : index
    %c0_4 = arith.constant 0 : index
    %2 = vector.load %arg4[%c0_3, %c0_4] : memref<1x128xf32, #tpu.memory_space<vmem>>, vector<1x128xf32>
    %cst = arith.constant dense<0.000000e+00> : vector<16x128xf32>
    %3 = tpu.matmul %0, %1, %cst {dimension_numbers = #tpu.dot_dimension_numbers<[1], [0], [0], [1], [0, 0, 1, 1], [], []>} : vector<16x4xf32>, vector<4x128xf32>, vector<16x128xf32> -> vector<16x128xf32>
    %4 = vector.broadcast %2 : vector<1x128xf32> to vector<16x128xf32>
    %5 = arith.addf %3, %4 : vector<16x128xf32>
    %c0_5 = arith.constant 0 : index
    %c0_6 = arith.constant 0 : index
    %6 = vector.load %arg11[%c0_5, %c0_6] : memref<16x128xf32, #tpu.memory_space<vmem>>, vector<16x128xf32>
    tpu.vector_store %arg11[%c0_5, %c0_6], %5 {strides = array<i32>} : memref<16x128xf32, #tpu.memory_space<vmem>>, vector<16x128xf32>,
    %c0_7 = arith.constant 0 : index
    %c0_8 = arith.constant 0 : index
    %7 = vector.load %arg3[%c0_7, %c0_8] : memref<32x128xf32, #tpu.memory_space<vmem>>, vector<32x128xf32>
    %c0_9 = arith.constant 0 : index
    %c0_10 = arith.constant 0 : index
    %8 = vector.load %arg11[%c0_9, %c0_10] : memref<16x128xf32, #tpu.memory_space<vmem>>, vector<2x128xf32>
    %9 = arith.negf %8 : vector<2x128xf32>
    %10 = math.exp %9 : vector<2x128xf32>
    %cst_11 = arith.constant 1.000000e+00 : f32
    %11 = vector.broadcast %cst_11 : f32 to vector<2x128xf32>
    %12 = arith.addf %11, %10 : vector<2x128xf32>
    %13 = arith.divf %11, %12 : vector<2x128xf32>
    %14 = math.tanh %8 : vector<2x128xf32>
    %15 = vector.extract_strided_slice %13 {offsets = [0, 0], sizes = [2, 32], strides = [1, 1]} : vector<2x128xf32> to vector<2x32xf32>
    %16 = vector.extract_strided_slice %14 {offsets = [0, 64], sizes = [2, 32], strides = [1, 1]} : vector<2x128xf32> to vector<2x32xf32>
    %17 = vector.extract_strided_slice %13 {offsets = [0, 96], sizes = [2, 32], strides = [1, 1]} : vector<2x128xf32> to vector<2x32xf32>
    %18 = arith.mulf %15, %16 : vector<2x32xf32>
    %19 = math.tanh %18 : vector<2x32xf32>
    %20 = arith.mulf %17, %19 : vector<2x32xf32>
    %c0_12 = arith.constant 0 : index
    %c0_13 = arith.constant 0 : index
    %21 = vector.load %arg12[%c0_12, %c0_13] : memref<16x32xf32, #tpu.memory_space<vmem>>, vector<2x32xf32>
    tpu.vector_store %arg12[%c0_12, %c0_13], %20 {strides = array<i32>} : memref<16x32xf32, #tpu.memory_space<vmem>>, vector<2x32xf32>,
    %c2 = arith.constant 2 : index
    %c0_14 = arith.constant 0 : index
    %22 = vector.load %arg11[%c2, %c0_14] : memref<16x128xf32, #tpu.memory_space<vmem>>, vector<2x128xf32>
    %cst_15 = arith.constant dense<0.000000e+00> : vector<2x128xf32>
    %23 = tpu.matmul %20, %7, %cst_15 {dimension_numbers = #tpu.dot_dimension_numbers<[1], [0], [0], [1], [0, 0, 1, 1], [], []>} : vector<2x32xf32>, vector<32x128xf32>, vector<2x128xf32> -> vector<2x128xf32>
    %24 = arith.addf %22, %23 : vector<2x128xf32>
    %25 = arith.negf %24 : vector<2x128xf32>
    %26 = math.exp %25 : vector<2x128xf32>
    %cst_16 = arith.constant 1.000000e+00 : f32
    %27 = vector.broadcast %cst_16 : f32 to vector<2x128xf32>
    %28 = arith.addf %27, %26 : vector<2x128xf32>
    %29 = arith.divf %27, %28 : vector<2x128xf32>
    %30 = math.tanh %24 : vector<2x128xf32>
    %31 = vector.extract_strided_slice %29 {offsets = [0, 0], sizes = [2, 32], strides = [1, 1]} : vector<2x128xf32> to vector<2x32xf32>
    %32 = vector.extract_strided_slice %29 {offsets = [0, 32], sizes = [2, 32], strides = [1, 1]} : vector<2x128xf32> to vector<2x32xf32>
    %33 = vector.extract_strided_slice %30 {offsets = [0, 64], sizes = [2, 32], strides = [1, 1]} : vector<2x128xf32> to vector<2x32xf32>
    %34 = vector.extract_strided_slice %29 {offsets = [0, 96], sizes = [2, 32], strides = [1, 1]} : vector<2x128xf32> to vector<2x32xf32>
    %35 = arith.mulf %32, %18 : vector<2x32xf32>
    %36 = arith.mulf %31, %33 : vector<2x32xf32>
    %37 = arith.addf %35, %36 : vector<2x32xf32>
    %38 = math.tanh %37 : vector<2x32xf32>
    %39 = arith.mulf %34, %38 : vector<2x32xf32>
    %c2_17 = arith.constant 2 : index
    %c0_18 = arith.constant 0 : index
    %40 = vector.load %arg12[%c2_17, %c0_18] : memref<16x32xf32, #tpu.memory_space<vmem>>, vector<2x32xf32>
    tpu.vector_store %arg12[%c2_17, %c0_18], %39 {strides = array<i32>} : memref<16x32xf32, #tpu.memory_space<vmem>>, vector<2x32xf32>,
    %c4 = arith.constant 4 : index
    %c0_19 = arith.constant 0 : index
    %41 = vector.load %arg11[%c4, %c0_19] : memref<16x128xf32, #tpu.memory_space<vmem>>, vector<2x128xf32>
    %cst_20 = arith.constant dense<0.000000e+00> : vector<2x128xf32>
    %42 = tpu.matmul %39, %7, %cst_20 {dimension_numbers = #tpu.dot_dimension_numbers<[1], [0], [0], [1], [0, 0, 1, 1], [], []>} : vector<2x32xf32>, vector<32x128xf32>, vector<2x128xf32> -> vector<2x128xf32>
    %43 = arith.addf %41, %42 : vector<2x128xf32>
    %44 = arith.negf %43 : vector<2x128xf32>
    %45 = math.exp %44 : vector<2x128xf32>
    %cst_21 = arith.constant 1.000000e+00 : f32
    %46 = vector.broadcast %cst_21 : f32 to vector<2x128xf32>
    %47 = arith.addf %46, %45 : vector<2x128xf32>
    %48 = arith.divf %46, %47 : vector<2x128xf32>
    %49 = math.tanh %43 : vector<2x128xf32>
    %50 = vector.extract_strided_slice %48 {offsets = [0, 0], sizes = [2, 32], strides = [1, 1]} : vector<2x128xf32> to vector<2x32xf32>
    %51 = vector.extract_strided_slice %48 {offsets = [0, 32], sizes = [2, 32], strides = [1, 1]} : vector<2x128xf32> to vector<2x32xf32>
    %52 = vector.extract_strided_slice %49 {offsets = [0, 64], sizes = [2, 32], strides = [1, 1]} : vector<2x128xf32> to vector<2x32xf32>
    %53 = vector.extract_strided_slice %48 {offsets = [0, 96], sizes = [2, 32], strides = [1, 1]} : vector<2x128xf32> to vector<2x32xf32>
    %54 = arith.mulf %51, %37 : vector<2x32xf32>
    %55 = arith.mulf %50, %52 : vector<2x32xf32>
    %56 = arith.addf %54, %55 : vector<2x32xf32>
    %57 = math.tanh %56 : vector<2x32xf32>
    %58 = arith.mulf %53, %57 : vector<2x32xf32>
    %c4_22 = arith.constant 4 : index
    %c0_23 = arith.constant 0 : index
    %59 = vector.load %arg12[%c4_22, %c0_23] : memref<16x32xf32, #tpu.memory_space<vmem>>, vector<2x32xf32>
    tpu.vector_store %arg12[%c4_22, %c0_23], %58 {strides = array<i32>} : memref<16x32xf32, #tpu.memory_space<vmem>>, vector<2x32xf32>,
    %c6 = arith.constant 6 : index
    %c0_24 = arith.constant 0 : index
    %60 = vector.load %arg11[%c6, %c0_24] : memref<16x128xf32, #tpu.memory_space<vmem>>, vector<2x128xf32>
    %cst_25 = arith.constant dense<0.000000e+00> : vector<2x128xf32>
    %61 = tpu.matmul %58, %7, %cst_25 {dimension_numbers = #tpu.dot_dimension_numbers<[1], [0], [0], [1], [0, 0, 1, 1], [], []>} : vector<2x32xf32>, vector<32x128xf32>, vector<2x128xf32> -> vector<2x128xf32>
    %62 = arith.addf %60, %61 : vector<2x128xf32>
    %63 = arith.negf %62 : vector<2x128xf32>
    %64 = math.exp %63 : vector<2x128xf32>
    %cst_26 = arith.constant 1.000000e+00 : f32
    %65 = vector.broadcast %cst_26 : f32 to vector<2x128xf32>
    %66 = arith.addf %65, %64 : vector<2x128xf32>
    %67 = arith.divf %65, %66 : vector<2x128xf32>
    %68 = math.tanh %62 : vector<2x128xf32>
    %69 = vector.extract_strided_slice %67 {offsets = [0, 0], sizes = [2, 32], strides = [1, 1]} : vector<2x128xf32> to vector<2x32xf32>
    %70 = vector.extract_strided_slice %67 {offsets = [0, 32], sizes = [2, 32], strides = [1, 1]} : vector<2x128xf32> to vector<2x32xf32>
    %71 = vector.extract_strided_slice %68 {offsets = [0, 64], sizes = [2, 32], strides = [1, 1]} : vector<2x128xf32> to vector<2x32xf32>
    %72 = vector.extract_strided_slice %67 {offsets = [0, 96], sizes = [2, 32], strides = [1, 1]} : vector<2x128xf32> to vector<2x32xf32>
    %73 = arith.mulf %70, %56 : vector<2x32xf32>
    %74 = arith.mulf %69, %71 : vector<2x32xf32>
    %75 = arith.addf %73, %74 : vector<2x32xf32>
    %76 = math.tanh %75 : vector<2x32xf32>
    %77 = arith.mulf %72, %76 : vector<2x32xf32>
    %c6_27 = arith.constant 6 : index
    %c0_28 = arith.constant 0 : index
    %78 = vector.load %arg12[%c6_27, %c0_28] : memref<16x32xf32, #tpu.memory_space<vmem>>, vector<2x32xf32>
    tpu.vector_store %arg12[%c6_27, %c0_28], %77 {strides = array<i32>} : memref<16x32xf32, #tpu.memory_space<vmem>>, vector<2x32xf32>,
    %c8 = arith.constant 8 : index
    %c0_29 = arith.constant 0 : index
    %79 = vector.load %arg11[%c8, %c0_29] : memref<16x128xf32, #tpu.memory_space<vmem>>, vector<2x128xf32>
    %cst_30 = arith.constant dense<0.000000e+00> : vector<2x128xf32>
    %80 = tpu.matmul %77, %7, %cst_30 {dimension_numbers = #tpu.dot_dimension_numbers<[1], [0], [0], [1], [0, 0, 1, 1], [], []>} : vector<2x32xf32>, vector<32x128xf32>, vector<2x128xf32> -> vector<2x128xf32>
    %81 = arith.addf %79, %80 : vector<2x128xf32>
    %82 = arith.negf %81 : vector<2x128xf32>
    %83 = math.exp %82 : vector<2x128xf32>
    %cst_31 = arith.constant 1.000000e+00 : f32
    %84 = vector.broadcast %cst_31 : f32 to vector<2x128xf32>
    %85 = arith.addf %84, %83 : vector<2x128xf32>
    %86 = arith.divf %84, %85 : vector<2x128xf32>
    %87 = math.tanh %81 : vector<2x128xf32>
    %88 = vector.extract_strided_slice %86 {offsets = [0, 0], sizes = [2, 32], strides = [1, 1]} : vector<2x128xf32> to vector<2x32xf32>
    %89 = vector.extract_strided_slice %86 {offsets = [0, 32], sizes = [2, 32], strides = [1, 1]} : vector<2x128xf32> to vector<2x32xf32>
    %90 = vector.extract_strided_slice %87 {offsets = [0, 64], sizes = [2, 32], strides = [1, 1]} : vector<2x128xf32> to vector<2x32xf32>
    %91 = vector.extract_strided_slice %86 {offsets = [0, 96], sizes = [2, 32], strides = [1, 1]} : vector<2x128xf32> to vector<2x32xf32>
    %92 = arith.mulf %89, %75 : vector<2x32xf32>
    %93 = arith.mulf %88, %90 : vector<2x32xf32>
    %94 = arith.addf %92, %93 : vector<2x32xf32>
    %95 = math.tanh %94 : vector<2x32xf32>
    %96 = arith.mulf %91, %95 : vector<2x32xf32>
    %c8_32 = arith.constant 8 : index
    %c0_33 = arith.constant 0 : index
    %97 = vector.load %arg12[%c8_32, %c0_33] : memref<16x32xf32, #tpu.memory_space<vmem>>, vector<2x32xf32>
    tpu.vector_store %arg12[%c8_32, %c0_33], %96 {strides = array<i32>} : memref<16x32xf32, #tpu.memory_space<vmem>>, vector<2x32xf32>,
    %c10 = arith.constant 10 : index
    %c0_34 = arith.constant 0 : index
    %98 = vector.load %arg11[%c10, %c0_34] : memref<16x128xf32, #tpu.memory_space<vmem>>, vector<2x128xf32>
    %cst_35 = arith.constant dense<0.000000e+00> : vector<2x128xf32>
    %99 = tpu.matmul %96, %7, %cst_35 {dimension_numbers = #tpu.dot_dimension_numbers<[1], [0], [0], [1], [0, 0, 1, 1], [], []>} : vector<2x32xf32>, vector<32x128xf32>, vector<2x128xf32> -> vector<2x128xf32>
    %100 = arith.addf %98, %99 : vector<2x128xf32>
    %101 = arith.negf %100 : vector<2x128xf32>
    %102 = math.exp %101 : vector<2x128xf32>
    %cst_36 = arith.constant 1.000000e+00 : f32
    %103 = vector.broadcast %cst_36 : f32 to vector<2x128xf32>
    %104 = arith.addf %103, %102 : vector<2x128xf32>
    %105 = arith.divf %103, %104 : vector<2x128xf32>
    %106 = math.tanh %100 : vector<2x128xf32>
    %107 = vector.extract_strided_slice %105 {offsets = [0, 0], sizes = [2, 32], strides = [1, 1]} : vector<2x128xf32> to vector<2x32xf32>
    %108 = vector.extract_strided_slice %105 {offsets = [0, 32], sizes = [2, 32], strides = [1, 1]} : vector<2x128xf32> to vector<2x32xf32>
    %109 = vector.extract_strided_slice %106 {offsets = [0, 64], sizes = [2, 32], strides = [1, 1]} : vector<2x128xf32> to vector<2x32xf32>
    %110 = vector.extract_strided_slice %105 {offsets = [0, 96], sizes = [2, 32], strides = [1, 1]} : vector<2x128xf32> to vector<2x32xf32>
    %111 = arith.mulf %108, %94 : vector<2x32xf32>
    %112 = arith.mulf %107, %109 : vector<2x32xf32>
    %113 = arith.addf %111, %112 : vector<2x32xf32>
    %114 = math.tanh %113 : vector<2x32xf32>
    %115 = arith.mulf %110, %114 : vector<2x32xf32>
    %c10_37 = arith.constant 10 : index
    %c0_38 = arith.constant 0 : index
    %116 = vector.load %arg12[%c10_37, %c0_38] : memref<16x32xf32, #tpu.memory_space<vmem>>, vector<2x32xf32>
    tpu.vector_store %arg12[%c10_37, %c0_38], %115 {strides = array<i32>} : memref<16x32xf32, #tpu.memory_space<vmem>>, vector<2x32xf32>,
    %c12 = arith.constant 12 : index
    %c0_39 = arith.constant 0 : index
    %117 = vector.load %arg11[%c12, %c0_39] : memref<16x128xf32, #tpu.memory_space<vmem>>, vector<2x128xf32>
    %cst_40 = arith.constant dense<0.000000e+00> : vector<2x128xf32>
    %118 = tpu.matmul %115, %7, %cst_40 {dimension_numbers = #tpu.dot_dimension_numbers<[1], [0], [0], [1], [0, 0, 1, 1], [], []>} : vector<2x32xf32>, vector<32x128xf32>, vector<2x128xf32> -> vector<2x128xf32>
    %119 = arith.addf %117, %118 : vector<2x128xf32>
    %120 = arith.negf %119 : vector<2x128xf32>
    %121 = math.exp %120 : vector<2x128xf32>
    %cst_41 = arith.constant 1.000000e+00 : f32
    %122 = vector.broadcast %cst_41 : f32 to vector<2x128xf32>
    %123 = arith.addf %122, %121 : vector<2x128xf32>
    %124 = arith.divf %122, %123 : vector<2x128xf32>
    %125 = math.tanh %119 : vector<2x128xf32>
    %126 = vector.extract_strided_slice %124 {offsets = [0, 0], sizes = [2, 32], strides = [1, 1]} : vector<2x128xf32> to vector<2x32xf32>
    %127 = vector.extract_strided_slice %124 {offsets = [0, 32], sizes = [2, 32], strides = [1, 1]} : vector<2x128xf32> to vector<2x32xf32>
    %128 = vector.extract_strided_slice %125 {offsets = [0, 64], sizes = [2, 32], strides = [1, 1]} : vector<2x128xf32> to vector<2x32xf32>
    %129 = vector.extract_strided_slice %124 {offsets = [0, 96], sizes = [2, 32], strides = [1, 1]} : vector<2x128xf32> to vector<2x32xf32>
    %130 = arith.mulf %127, %113 : vector<2x32xf32>
    %131 = arith.mulf %126, %128 : vector<2x32xf32>
    %132 = arith.addf %130, %131 : vector<2x32xf32>
    %133 = math.tanh %132 : vector<2x32xf32>
    %134 = arith.mulf %129, %133 : vector<2x32xf32>
    %c12_42 = arith.constant 12 : index
    %c0_43 = arith.constant 0 : index
    %135 = vector.load %arg12[%c12_42, %c0_43] : memref<16x32xf32, #tpu.memory_space<vmem>>, vector<2x32xf32>
    tpu.vector_store %arg12[%c12_42, %c0_43], %134 {strides = array<i32>} : memref<16x32xf32, #tpu.memory_space<vmem>>, vector<2x32xf32>,
    %c14 = arith.constant 14 : index
    %c0_44 = arith.constant 0 : index
    %136 = vector.load %arg11[%c14, %c0_44] : memref<16x128xf32, #tpu.memory_space<vmem>>, vector<2x128xf32>
    %cst_45 = arith.constant dense<0.000000e+00> : vector<2x128xf32>
    %137 = tpu.matmul %134, %7, %cst_45 {dimension_numbers = #tpu.dot_dimension_numbers<[1], [0], [0], [1], [0, 0, 1, 1], [], []>} : vector<2x32xf32>, vector<32x128xf32>, vector<2x128xf32> -> vector<2x128xf32>
    %138 = arith.addf %136, %137 : vector<2x128xf32>
    %139 = arith.negf %138 : vector<2x128xf32>
    %140 = math.exp %139 : vector<2x128xf32>
    %cst_46 = arith.constant 1.000000e+00 : f32
    %141 = vector.broadcast %cst_46 : f32 to vector<2x128xf32>
    %142 = arith.addf %141, %140 : vector<2x128xf32>
    %143 = arith.divf %141, %142 : vector<2x128xf32>
    %144 = math.tanh %138 : vector<2x128xf32>
    %145 = vector.extract_strided_slice %143 {offsets = [0, 0], sizes = [2, 32], strides = [1, 1]} : vector<2x128xf32> to vector<2x32xf32>
    %146 = vector.extract_strided_slice %143 {offsets = [0, 32], sizes = [2, 32], strides = [1, 1]} : vector<2x128xf32> to vector<2x32xf32>
    %147 = vector.extract_strided_slice %144 {offsets = [0, 64], sizes = [2, 32], strides = [1, 1]} : vector<2x128xf32> to vector<2x32xf32>
    %148 = vector.extract_strided_slice %143 {offsets = [0, 96], sizes = [2, 32], strides = [1, 1]} : vector<2x128xf32> to vector<2x32xf32>
    %149 = arith.mulf %146, %132 : vector<2x32xf32>
    %150 = arith.mulf %145, %147 : vector<2x32xf32>
    %151 = arith.addf %149, %150 : vector<2x32xf32>
    %152 = math.tanh %151 : vector<2x32xf32>
    %153 = arith.mulf %148, %152 : vector<2x32xf32>
    %c14_47 = arith.constant 14 : index
    %c0_48 = arith.constant 0 : index
    %154 = vector.load %arg12[%c14_47, %c0_48] : memref<16x32xf32, #tpu.memory_space<vmem>>, vector<2x32xf32>
    tpu.vector_store %arg12[%c14_47, %c0_48], %153 {strides = array<i32>} : memref<16x32xf32, #tpu.memory_space<vmem>>, vector<2x32xf32>,
    %c0_49 = arith.constant 0 : index
    %c0_50 = arith.constant 0 : index
    %155 = vector.load %arg5[%c0_49, %c0_50] : memref<32x128xf32, #tpu.memory_space<vmem>>, vector<32x128xf32>
    %c0_51 = arith.constant 0 : index
    %c0_52 = arith.constant 0 : index
    %156 = vector.load %arg7[%c0_51, %c0_52] : memref<1x128xf32, #tpu.memory_space<vmem>>, vector<1x128xf32>
    %c0_53 = arith.constant 0 : index
    %c0_54 = arith.constant 0 : index
    %157 = vector.load %arg12[%c0_53, %c0_54] : memref<16x32xf32, #tpu.memory_space<vmem>>, vector<16x32xf32>
    %cst_55 = arith.constant dense<0.000000e+00> : vector<16x128xf32>
    %158 = tpu.matmul %157, %155, %cst_55 {dimension_numbers = #tpu.dot_dimension_numbers<[1], [0], [0], [1], [0, 0, 1, 1], [], []>} : vector<16x32xf32>, vector<32x128xf32>, vector<16x128xf32> -> vector<16x128xf32>
    %159 = vector.broadcast %156 : vector<1x128xf32> to vector<16x128xf32>
    %160 = arith.addf %158, %159 : vector<16x128xf32>
    %c0_56 = arith.constant 0 : index
    %c0_57 = arith.constant 0 : index
    %161 = vector.load %arg11[%c0_56, %c0_57] : memref<16x128xf32, #tpu.memory_space<vmem>>, vector<16x128xf32>
    tpu.vector_store %arg11[%c0_56, %c0_57], %160 {strides = array<i32>} : memref<16x128xf32, #tpu.memory_space<vmem>>, vector<16x128xf32>,
    %c0_58 = arith.constant 0 : index
    %c0_59 = arith.constant 0 : index
    %162 = vector.load %arg6[%c0_58, %c0_59] : memref<32x128xf32, #tpu.memory_space<vmem>>, vector<32x128xf32>
    %c0_60 = arith.constant 0 : index
    %c0_61 = arith.constant 0 : index
    %163 = vector.load %arg11[%c0_60, %c0_61] : memref<16x128xf32, #tpu.memory_space<vmem>>, vector<2x128xf32>
    %164 = arith.negf %163 : vector<2x128xf32>
    %165 = math.exp %164 : vector<2x128xf32>
    %cst_62 = arith.constant 1.000000e+00 : f32
    %166 = vector.broadcast %cst_62 : f32 to vector<2x128xf32>
    %167 = arith.addf %166, %165 : vector<2x128xf32>
    %168 = arith.divf %166, %167 : vector<2x128xf32>
    %169 = math.tanh %163 : vector<2x128xf32>
    %170 = vector.extract_strided_slice %168 {offsets = [0, 0], sizes = [2, 32], strides = [1, 1]} : vector<2x128xf32> to vector<2x32xf32>
    %171 = vector.extract_strided_slice %169 {offsets = [0, 64], sizes = [2, 32], strides = [1, 1]} : vector<2x128xf32> to vector<2x32xf32>
    %172 = vector.extract_strided_slice %168 {offsets = [0, 96], sizes = [2, 32], strides = [1, 1]} : vector<2x128xf32> to vector<2x32xf32>
    %173 = arith.mulf %170, %171 : vector<2x32xf32>
    %174 = math.tanh %173 : vector<2x32xf32>
    %175 = arith.mulf %172, %174 : vector<2x32xf32>
    %c2_63 = arith.constant 2 : index
    %c0_64 = arith.constant 0 : index
    %176 = vector.load %arg11[%c2_63, %c0_64] : memref<16x128xf32, #tpu.memory_space<vmem>>, vector<2x128xf32>
    %cst_65 = arith.constant dense<0.000000e+00> : vector<2x128xf32>
    %177 = tpu.matmul %175, %162, %cst_65 {dimension_numbers = #tpu.dot_dimension_numbers<[1], [0], [0], [1], [0, 0, 1, 1], [], []>} : vector<2x32xf32>, vector<32x128xf32>, vector<2x128xf32> -> vector<2x128xf32>
    %178 = arith.addf %176, %177 : vector<2x128xf32>
    %179 = arith.negf %178 : vector<2x128xf32>
    %180 = math.exp %179 : vector<2x128xf32>
    %cst_66 = arith.constant 1.000000e+00 : f32
    %181 = vector.broadcast %cst_66 : f32 to vector<2x128xf32>
    %182 = arith.addf %181, %180 : vector<2x128xf32>
    %183 = arith.divf %181, %182 : vector<2x128xf32>
    %184 = math.tanh %178 : vector<2x128xf32>
    %185 = vector.extract_strided_slice %183 {offsets = [0, 0], sizes = [2, 32], strides = [1, 1]} : vector<2x128xf32> to vector<2x32xf32>
    %186 = vector.extract_strided_slice %183 {offsets = [0, 32], sizes = [2, 32], strides = [1, 1]} : vector<2x128xf32> to vector<2x32xf32>
    %187 = vector.extract_strided_slice %184 {offsets = [0, 64], sizes = [2, 32], strides = [1, 1]} : vector<2x128xf32> to vector<2x32xf32>
    %188 = vector.extract_strided_slice %183 {offsets = [0, 96], sizes = [2, 32], strides = [1, 1]} : vector<2x128xf32> to vector<2x32xf32>
    %189 = arith.mulf %186, %173 : vector<2x32xf32>
    %190 = arith.mulf %185, %187 : vector<2x32xf32>
    %191 = arith.addf %189, %190 : vector<2x32xf32>
    %192 = math.tanh %191 : vector<2x32xf32>
    %193 = arith.mulf %188, %192 : vector<2x32xf32>
    %c4_67 = arith.constant 4 : index
    %c0_68 = arith.constant 0 : index
    %194 = vector.load %arg11[%c4_67, %c0_68] : memref<16x128xf32, #tpu.memory_space<vmem>>, vector<2x128xf32>
    %cst_69 = arith.constant dense<0.000000e+00> : vector<2x128xf32>
    %195 = tpu.matmul %193, %162, %cst_69 {dimension_numbers = #tpu.dot_dimension_numbers<[1], [0], [0], [1], [0, 0, 1, 1], [], []>} : vector<2x32xf32>, vector<32x128xf32>, vector<2x128xf32> -> vector<2x128xf32>
    %196 = arith.addf %194, %195 : vector<2x128xf32>
    %197 = arith.negf %196 : vector<2x128xf32>
    %198 = math.exp %197 : vector<2x128xf32>
    %cst_70 = arith.constant 1.000000e+00 : f32
    %199 = vector.broadcast %cst_70 : f32 to vector<2x128xf32>
    %200 = arith.addf %199, %198 : vector<2x128xf32>
    %201 = arith.divf %199, %200 : vector<2x128xf32>
    %202 = math.tanh %196 : vector<2x128xf32>
    %203 = vector.extract_strided_slice %201 {offsets = [0, 0], sizes = [2, 32], strides = [1, 1]} : vector<2x128xf32> to vector<2x32xf32>
    %204 = vector.extract_strided_slice %201 {offsets = [0, 32], sizes = [2, 32], strides = [1, 1]} : vector<2x128xf32> to vector<2x32xf32>
    %205 = vector.extract_strided_slice %202 {offsets = [0, 64], sizes = [2, 32], strides = [1, 1]} : vector<2x128xf32> to vector<2x32xf32>
    %206 = vector.extract_strided_slice %201 {offsets = [0, 96], sizes = [2, 32], strides = [1, 1]} : vector<2x128xf32> to vector<2x32xf32>
    %207 = arith.mulf %204, %191 : vector<2x32xf32>
    %208 = arith.mulf %203, %205 : vector<2x32xf32>
    %209 = arith.addf %207, %208 : vector<2x32xf32>
    %210 = math.tanh %209 : vector<2x32xf32>
    %211 = arith.mulf %206, %210 : vector<2x32xf32>
    %c6_71 = arith.constant 6 : index
    %c0_72 = arith.constant 0 : index
    %212 = vector.load %arg11[%c6_71, %c0_72] : memref<16x128xf32, #tpu.memory_space<vmem>>, vector<2x128xf32>
    %cst_73 = arith.constant dense<0.000000e+00> : vector<2x128xf32>
    %213 = tpu.matmul %211, %162, %cst_73 {dimension_numbers = #tpu.dot_dimension_numbers<[1], [0], [0], [1], [0, 0, 1, 1], [], []>} : vector<2x32xf32>, vector<32x128xf32>, vector<2x128xf32> -> vector<2x128xf32>
    %214 = arith.addf %212, %213 : vector<2x128xf32>
    %215 = arith.negf %214 : vector<2x128xf32>
    %216 = math.exp %215 : vector<2x128xf32>
    %cst_74 = arith.constant 1.000000e+00 : f32
    %217 = vector.broadcast %cst_74 : f32 to vector<2x128xf32>
    %218 = arith.addf %217, %216 : vector<2x128xf32>
    %219 = arith.divf %217, %218 : vector<2x128xf32>
    %220 = math.tanh %214 : vector<2x128xf32>
    %221 = vector.extract_strided_slice %219 {offsets = [0, 0], sizes = [2, 32], strides = [1, 1]} : vector<2x128xf32> to vector<2x32xf32>
    %222 = vector.extract_strided_slice %219 {offsets = [0, 32], sizes = [2, 32], strides = [1, 1]} : vector<2x128xf32> to vector<2x32xf32>
    %223 = vector.extract_strided_slice %220 {offsets = [0, 64], sizes = [2, 32], strides = [1, 1]} : vector<2x128xf32> to vector<2x32xf32>
    %224 = vector.extract_strided_slice %219 {offsets = [0, 96], sizes = [2, 32], strides = [1, 1]} : vector<2x128xf32> to vector<2x32xf32>
    %225 = arith.mulf %222, %209 : vector<2x32xf32>
    %226 = arith.mulf %221, %223 : vector<2x32xf32>
    %227 = arith.addf %225, %226 : vector<2x32xf32>
    %228 = math.tanh %227 : vector<2x32xf32>
    %229 = arith.mulf %224, %228 : vector<2x32xf32>
    %c8_75 = arith.constant 8 : index
    %c0_76 = arith.constant 0 : index
    %230 = vector.load %arg11[%c8_75, %c0_76] : memref<16x128xf32, #tpu.memory_space<vmem>>, vector<2x128xf32>
    %cst_77 = arith.constant dense<0.000000e+00> : vector<2x128xf32>
    %231 = tpu.matmul %229, %162, %cst_77 {dimension_numbers = #tpu.dot_dimension_numbers<[1], [0], [0], [1], [0, 0, 1, 1], [], []>} : vector<2x32xf32>, vector<32x128xf32>, vector<2x128xf32> -> vector<2x128xf32>
    %232 = arith.addf %230, %231 : vector<2x128xf32>
    %233 = arith.negf %232 : vector<2x128xf32>
    %234 = math.exp %233 : vector<2x128xf32>
    %cst_78 = arith.constant 1.000000e+00 : f32
    %235 = vector.broadcast %cst_78 : f32 to vector<2x128xf32>
    %236 = arith.addf %235, %234 : vector<2x128xf32>
    %237 = arith.divf %235, %236 : vector<2x128xf32>
    %238 = math.tanh %232 : vector<2x128xf32>
    %239 = vector.extract_strided_slice %237 {offsets = [0, 0], sizes = [2, 32], strides = [1, 1]} : vector<2x128xf32> to vector<2x32xf32>
    %240 = vector.extract_strided_slice %237 {offsets = [0, 32], sizes = [2, 32], strides = [1, 1]} : vector<2x128xf32> to vector<2x32xf32>
    %241 = vector.extract_strided_slice %238 {offsets = [0, 64], sizes = [2, 32], strides = [1, 1]} : vector<2x128xf32> to vector<2x32xf32>
    %242 = vector.extract_strided_slice %237 {offsets = [0, 96], sizes = [2, 32], strides = [1, 1]} : vector<2x128xf32> to vector<2x32xf32>
    %243 = arith.mulf %240, %227 : vector<2x32xf32>
    %244 = arith.mulf %239, %241 : vector<2x32xf32>
    %245 = arith.addf %243, %244 : vector<2x32xf32>
    %246 = math.tanh %245 : vector<2x32xf32>
    %247 = arith.mulf %242, %246 : vector<2x32xf32>
    %c10_79 = arith.constant 10 : index
    %c0_80 = arith.constant 0 : index
    %248 = vector.load %arg11[%c10_79, %c0_80] : memref<16x128xf32, #tpu.memory_space<vmem>>, vector<2x128xf32>
    %cst_81 = arith.constant dense<0.000000e+00> : vector<2x128xf32>
    %249 = tpu.matmul %247, %162, %cst_81 {dimension_numbers = #tpu.dot_dimension_numbers<[1], [0], [0], [1], [0, 0, 1, 1], [], []>} : vector<2x32xf32>, vector<32x128xf32>, vector<2x128xf32> -> vector<2x128xf32>
    %250 = arith.addf %248, %249 : vector<2x128xf32>
    %251 = arith.negf %250 : vector<2x128xf32>
    %252 = math.exp %251 : vector<2x128xf32>
    %cst_82 = arith.constant 1.000000e+00 : f32
    %253 = vector.broadcast %cst_82 : f32 to vector<2x128xf32>
    %254 = arith.addf %253, %252 : vector<2x128xf32>
    %255 = arith.divf %253, %254 : vector<2x128xf32>
    %256 = math.tanh %250 : vector<2x128xf32>
    %257 = vector.extract_strided_slice %255 {offsets = [0, 0], sizes = [2, 32], strides = [1, 1]} : vector<2x128xf32> to vector<2x32xf32>
    %258 = vector.extract_strided_slice %255 {offsets = [0, 32], sizes = [2, 32], strides = [1, 1]} : vector<2x128xf32> to vector<2x32xf32>
    %259 = vector.extract_strided_slice %256 {offsets = [0, 64], sizes = [2, 32], strides = [1, 1]} : vector<2x128xf32> to vector<2x32xf32>
    %260 = vector.extract_strided_slice %255 {offsets = [0, 96], sizes = [2, 32], strides = [1, 1]} : vector<2x128xf32> to vector<2x32xf32>
    %261 = arith.mulf %258, %245 : vector<2x32xf32>
    %262 = arith.mulf %257, %259 : vector<2x32xf32>
    %263 = arith.addf %261, %262 : vector<2x32xf32>
    %264 = math.tanh %263 : vector<2x32xf32>
    %265 = arith.mulf %260, %264 : vector<2x32xf32>
    %c12_83 = arith.constant 12 : index
    %c0_84 = arith.constant 0 : index
    %266 = vector.load %arg11[%c12_83, %c0_84] : memref<16x128xf32, #tpu.memory_space<vmem>>, vector<2x128xf32>
    %cst_85 = arith.constant dense<0.000000e+00> : vector<2x128xf32>
    %267 = tpu.matmul %265, %162, %cst_85 {dimension_numbers = #tpu.dot_dimension_numbers<[1], [0], [0], [1], [0, 0, 1, 1], [], []>} : vector<2x32xf32>, vector<32x128xf32>, vector<2x128xf32> -> vector<2x128xf32>
    %268 = arith.addf %266, %267 : vector<2x128xf32>
    %269 = arith.negf %268 : vector<2x128xf32>
    %270 = math.exp %269 : vector<2x128xf32>
    %cst_86 = arith.constant 1.000000e+00 : f32
    %271 = vector.broadcast %cst_86 : f32 to vector<2x128xf32>
    %272 = arith.addf %271, %270 : vector<2x128xf32>
    %273 = arith.divf %271, %272 : vector<2x128xf32>
    %274 = math.tanh %268 : vector<2x128xf32>
    %275 = vector.extract_strided_slice %273 {offsets = [0, 0], sizes = [2, 32], strides = [1, 1]} : vector<2x128xf32> to vector<2x32xf32>
    %276 = vector.extract_strided_slice %273 {offsets = [0, 32], sizes = [2, 32], strides = [1, 1]} : vector<2x128xf32> to vector<2x32xf32>
    %277 = vector.extract_strided_slice %274 {offsets = [0, 64], sizes = [2, 32], strides = [1, 1]} : vector<2x128xf32> to vector<2x32xf32>
    %278 = vector.extract_strided_slice %273 {offsets = [0, 96], sizes = [2, 32], strides = [1, 1]} : vector<2x128xf32> to vector<2x32xf32>
    %279 = arith.mulf %276, %263 : vector<2x32xf32>
    %280 = arith.mulf %275, %277 : vector<2x32xf32>
    %281 = arith.addf %279, %280 : vector<2x32xf32>
    %282 = math.tanh %281 : vector<2x32xf32>
    %283 = arith.mulf %278, %282 : vector<2x32xf32>
    %c14_87 = arith.constant 14 : index
    %c0_88 = arith.constant 0 : index
    %284 = vector.load %arg11[%c14_87, %c0_88] : memref<16x128xf32, #tpu.memory_space<vmem>>, vector<2x128xf32>
    %cst_89 = arith.constant dense<0.000000e+00> : vector<2x128xf32>
    %285 = tpu.matmul %283, %162, %cst_89 {dimension_numbers = #tpu.dot_dimension_numbers<[1], [0], [0], [1], [0, 0, 1, 1], [], []>} : vector<2x32xf32>, vector<32x128xf32>, vector<2x128xf32> -> vector<2x128xf32>
    %286 = arith.addf %284, %285 : vector<2x128xf32>
    %287 = arith.negf %286 : vector<2x128xf32>
    %288 = math.exp %287 : vector<2x128xf32>
    %cst_90 = arith.constant 1.000000e+00 : f32
    %289 = vector.broadcast %cst_90 : f32 to vector<2x128xf32>
    %290 = arith.addf %289, %288 : vector<2x128xf32>
    %291 = arith.divf %289, %290 : vector<2x128xf32>
    %292 = math.tanh %286 : vector<2x128xf32>
    %293 = vector.extract_strided_slice %291 {offsets = [0, 0], sizes = [2, 32], strides = [1, 1]} : vector<2x128xf32> to vector<2x32xf32>
    %294 = vector.extract_strided_slice %291 {offsets = [0, 32], sizes = [2, 32], strides = [1, 1]} : vector<2x128xf32> to vector<2x32xf32>
    %295 = vector.extract_strided_slice %292 {offsets = [0, 64], sizes = [2, 32], strides = [1, 1]} : vector<2x128xf32> to vector<2x32xf32>
    %296 = vector.extract_strided_slice %291 {offsets = [0, 96], sizes = [2, 32], strides = [1, 1]} : vector<2x128xf32> to vector<2x32xf32>
    %297 = arith.mulf %294, %281 : vector<2x32xf32>
    %298 = arith.mulf %293, %295 : vector<2x32xf32>
    %299 = arith.addf %297, %298 : vector<2x32xf32>
    %300 = math.tanh %299 : vector<2x32xf32>
    %301 = arith.mulf %296, %300 : vector<2x32xf32>
    %c0_91 = arith.constant 0 : index
    %c0_92 = arith.constant 0 : index
    %302 = vector.load %arg8[%c0_91, %c0_92] : memref<32x5xf32, #tpu.memory_space<vmem>>, vector<32x5xf32>
    %cst_93 = arith.constant dense<0.000000e+00> : vector<2x5xf32>
    %303 = tpu.matmul %301, %302, %cst_93 {dimension_numbers = #tpu.dot_dimension_numbers<[1], [0], [0], [1], [0, 0, 1, 1], [], []>} : vector<2x32xf32>, vector<32x5xf32>, vector<2x5xf32> -> vector<2x5xf32>
    %c0_94 = arith.constant 0 : index
    %c0_95 = arith.constant 0 : index
    %304 = vector.load %arg9[%c0_94, %c0_95] : memref<1x5xf32, #tpu.memory_space<vmem>>, vector<1x5xf32>
    %305 = vector.broadcast %304 : vector<1x5xf32> to vector<2x5xf32>
    %306 = arith.addf %303, %305 : vector<2x5xf32>
    %c0_96 = arith.constant 0 : index
    %c0_97 = arith.constant 0 : index
    %307 = vector.load %arg10[%c0_96, %c0_97] : memref<2x5xf32, #tpu.memory_space<vmem>>, vector<2x5xf32>
    tpu.vector_store %arg10[%c0_96, %c0_97], %306 {strides = array<i32>} : memref<2x5xf32, #tpu.memory_space<vmem>>, vector<2x5xf32>,
    return
  }
  func.func @transform_0(%arg0: i32) -> (i32, i32) {
    %c0_i32 = arith.constant 0 : i32
    %c0_i32_0 = arith.constant 0 : i32
    %c0_i32_1 = arith.constant 0 : i32
    return %c0_i32, %c0_i32_0 : i32, i32
  }
  func.func @transform_1(%arg0: i32) -> (i32, i32) {
    %c0_i32 = arith.constant 0 : i32
    %c0_i32_0 = arith.constant 0 : i32
    %c0_i32_1 = arith.constant 0 : i32
    return %c0_i32, %c0_i32_0 : i32, i32
  }
  func.func @transform_2(%arg0: i32) -> (i32, i32) {
    %c0_i32 = arith.constant 0 : i32
    %c0_i32_0 = arith.constant 0 : i32
    %c0_i32_1 = arith.constant 0 : i32
    return %c0_i32, %c0_i32_0 : i32, i32
  }
  func.func @transform_3(%arg0: i32) -> (i32, i32) {
    %c0_i32 = arith.constant 0 : i32
    %c0_i32_0 = arith.constant 0 : i32
    %c0_i32_1 = arith.constant 0 : i32
    return %c0_i32, %c0_i32_0 : i32, i32
  }
  func.func @transform_4(%arg0: i32) -> (i32, i32) {
    %c0_i32 = arith.constant 0 : i32
    %c0_i32_0 = arith.constant 0 : i32
    %c0_i32_1 = arith.constant 0 : i32
    return %c0_i32, %c0_i32_0 : i32, i32
  }
  func.func @transform_5(%arg0: i32) -> (i32, i32) {
    %c0_i32 = arith.constant 0 : i32
    %c0_i32_0 = arith.constant 0 : i32
    %c0_i32_1 = arith.constant 0 : i32
    return %c0_i32, %c0_i32_0 : i32, i32
  }
  func.func @transform_6(%arg0: i32) -> (i32, i32) {
    %c0_i32 = arith.constant 0 : i32
    %c0_i32_0 = arith.constant 0 : i32
    %c0_i32_1 = arith.constant 0 : i32
    return %c0_i32, %c0_i32_0 : i32, i32
  }
  func.func @transform_7(%arg0: i32) -> (i32, i32) {
    %c0_i32 = arith.constant 0 : i32
    %c0_i32_0 = arith.constant 0 : i32
    %c0_i32_1 = arith.constant 0 : i32
    return %c0_i32, %c0_i32_0 : i32, i32
  }
  func.func @transform_8(%arg0: i32) -> (i32, i32) {
    %c0_i32 = arith.constant 0 : i32
    %c0_i32_0 = arith.constant 0 : i32
    %c0_i32_1 = arith.constant 0 : i32
    return %c0_i32, %c0_i32_0 : i32, i32
  }
  func.func @transform_9(%arg0: i32) -> (i32, i32) {
    %c0_i32 = arith.constant 0 : i32
    %c0_i32_0 = arith.constant 0 : i32
    %c0_i32_1 = arith.constant 0 : i32
    return %c0_i32, %c0_i32_0 : i32, i32
  }
}

</mosaic_0001>

<bundles_post_ra>
// kernel: model_forward.1
= control target key start
LH: loop header
LB: loop body
LE: loop exit
PB: predicated region body
PF: predicated region fallthrough
CT: control target
= control target key end

     0   :  { %14 = vsyncpa [#allocation5], 0  ;;  %s1720_s0 = inlined_call_operand.vmem [shape: f32[16,4], index: 0, kind: input, shape index: {}]   ;;  %s1721_s1 = inlined_call_operand.vmem [shape: f32[4,128], index: 1, kind: input, shape index: {}]   ;;  %s1722_s2 = inlined_call_operand.vmem [shape: f32[32,128], index: 2, kind: input, shape index: {}]   ;;  %s1723_s3 = inlined_call_operand.vmem [shape: f32[1,128], index: 3, kind: input, shape index: {}]   ;;  %s1724_s4 = inlined_call_operand.hbm [shape: f32[32,128], index: 4, kind: input, shape index: {}]   ;;  %s1725_s5 = inlined_call_operand.hbm [shape: f32[32,128], index: 5, kind: input, shape index: {}]   ;;  %s1726_s6 = inlined_call_operand.vmem [shape: f32[1,128], index: 6, kind: input, shape index: {}]   ;;  %s1727_s7 = inlined_call_operand.vmem [shape: f32[32,5], index: 7, kind: input, shape index: {}]   ;;  %s1728_s8 = inlined_call_operand.vmem [shape: f32[1,5], index: 8, kind: input, shape index: {}]   ;;  %s1729_s9 = inlined_call_operand.hbm [shape: f32[2,5], index: 9, kind: output, shape index: {}]  }
   0x1   :  { %15 = vsyncpa [#allocation8], 0 }
   0x2   :  { %16 = vsyncpa [#allocation6], 0  ;;  %s29_s11 = sshll.u32 %s1724_s4, 4  ;;  %s1452_s12 = smov [#allocation4]   ;;  %s30_s11 = int_to_ptr.hbm [resolvable:$true] %s29_s11 }
   0x3   :  { %s31_s13 = sshll.u32 %s1452_s12, 4  ;;  %s42_s16 = sshll.u32 %s1725_s5, 4  ;;  %s32_s13 = int_to_ptr.vmem [resolvable:$true] %s31_s13  ;;  %s43_s16 = int_to_ptr.hbm [resolvable:$true] %s42_s16 }
   0x4   :  { %s1453_s17 = smov 128   ;;  %s1454_s18 = smov 8  }
   0x5   :  { %37 = dma.hbm_to_vmem [thread:$0]  %s30_s11, 512, %s32_s13, [#allocation5], %s1453_s17, %s1453_s17, %s1454_s18  }
   0x6   :  { %s1455_s19 = smov [#allocation7]  }
   0x7   :  { %s44_s20 = sshll.u32 %s1455_s19, 4  ;;  %s45_s20 = int_to_ptr.vmem [resolvable:$true] %s44_s20 }
   0x8   :  { %50 = dma.hbm_to_vmem [thread:$0]  %s43_s16, 512, %s45_s20, [#allocation8], %s1453_s17, %s1453_s17, %s1454_s18  }
   0x9   :  { %1446 = dma.done.wait [#allocation5], 512  }
   0xa   :  { %1447 = vsyncadd [#allocation5], 4294966784 }
   0xb   :  { %1448 = dma.done.wait [#allocation8], 512  }
   0xc   :  { %1449 = vsyncadd [#allocation8], 4294966784  ;;  %vm79_vm0 = vcmask 1043456   ;;  %vm72_vm1 = vcmask 31744   ;;  %v67_v0 = vld [vmem:[%s1721_s1] sm:$0xf] }
   0xd   :  { %v65_v1 = vld [vmem:[%s1720_s0] sm:$0xff]  ;;  %1199 = vmatpush.msk.msra.mxu0 %vm79_vm0, %v67_v0  ;;  %s1456_s1 = smov 64   ;;  %s1458_s25 = smov 96   ;;  %v111_v23 = vld [vmem:[%s1722_s2 + $0x18] sm:$0xff]  ;;  %v110_v24 = vld [vmem:[%s1722_s2 + $0x10] sm:$0xff]  ;;  %vm148_vm6 = vcmask 254976  }
   0xe   :  { %1200 = vmatmul.msk.f32.vlgmr.msra.gmra.mxu0 %vm72_vm1, %v65_v1  ;;  %v1526_v2 = vld [vmem:[%s1723_s3] ss:$0 sm:$0xff]  ;;  %s1457_s3 = smov 32   ;;  %166 = vmatpush.msra.mxu1 %v111_v23  ;;  %v109_v25 = vld [vmem:[%s1722_s2 + $0x8] sm:$0xff]  ;;  %vm151_vm7 = vcmask 261120   ;;  %s1459_s5 = smov [#allocation9]  }
   0xf   :  { %236 = vmatpush.msra.mxu2 %v111_v23  ;;  %302 = vmatpush.msra.mxu3 %v111_v23  ;;  %v108_v26 = vld [vmem:[%s1722_s2] sm:$0xff]  ;;  %s1186_s23 = sshll.u32 %s1459_s5, 4  ;;  %s1187_s23 = int_to_ptr.vmem [resolvable:$true] %s1186_s23 }
  0x10   :  { %566 = vmatpush.msrb.mxu0 %v111_v23  ;;  %167 = vmatpush.msra.mxu1 %v110_v24 }
  0x11   :  { %237 = vmatpush.msra.mxu2 %v110_v24  ;;  %303 = vmatpush.msra.mxu3 %v110_v24 }
  0x12   :  { %567 = vmatpush.msrb.mxu0 %v110_v24  ;;  %168 = vmatpush.msra.mxu1 %v109_v25 }
  0x13   :  { %238 = vmatpush.msra.mxu2 %v109_v25  ;;  %304 = vmatpush.msra.mxu3 %v109_v25 }
  0x14   :  { %568 = vmatpush.msrb.mxu0 %v109_v25  ;;  %169 = vmatpush.msra.mxu1 %v108_v26 }
  0x15   :  { %239 = vmatpush.msra.mxu2 %v108_v26  ;;  %305 = vmatpush.msra.mxu3 %v108_v26 }
  0x16   :  { %368 = vmatpush.msrb.mxu1 %v111_v23  ;;  %569 = vmatpush.msrb.mxu0 %v108_v26 }
  0x17   :  { %434 = vmatpush.msrb.mxu2 %v111_v23  ;;  %500 = vmatpush.msrb.mxu3 %v111_v23 }
  0x18   :  { %369 = vmatpush.msrb.mxu1 %v110_v24 }
  0x19   :  { %435 = vmatpush.msrb.mxu2 %v110_v24  ;;  %501 = vmatpush.msrb.mxu3 %v110_v24 }
  0x1a   :  { %370 = vmatpush.msrb.mxu1 %v109_v25 }
  0x1b   :  { %436 = vmatpush.msrb.mxu2 %v109_v25  ;;  %502 = vmatpush.msrb.mxu3 %v109_v25 }
  0x1c   :  { %371 = vmatpush.msrb.mxu1 %v108_v26 }
  0x1d   :  { %437 = vmatpush.msrb.mxu2 %v108_v26  ;;  %503 = vmatpush.msrb.mxu3 %v108_v26 }
  0x8b   :  { %v100_v3 = vpop.f32.mrf.mxu0 }
  0x8c   :  { %v101_v4 = vadd.f32 %v1526_v2, %v100_v3 }
  0x8e   :  { %106 = vst [vmem:[#allocation2] sm:$0xff] %v101_v4 }
  0x95   :  { %v112_v5 = vld [vmem:[#allocation2] sm:$0x3]  ;;  %v150_v30 = vld [vmem:[#allocation2 + $0x2] sm:$0x3]  ;;  %v221_v57 = vld [vmem:[#allocation2 + $0x4] sm:$0x3] }
  0x96   :  { %1246 = vtanh.f32 %v112_v5  ;;  %v1202_v7 = vmul.f32 -1.442695, %v112_v5 }
  0x98   :  { %1248 = vpow2.f32 %v1202_v7 }
  0x9c   :  { %v1247_v6 = vpop.eup %1246 }
  0x9d   :  { %134 = vrot.lane.b32.xlu0 %v1247_v6, %s1456_s1 }
  0x9e   :  { %v1249_v8 = vpop.eup %1248 }
  0x9f   :  { %v116_v9 = vadd.f32 1.0, %v1249_v8 }
  0xa1   :  { %1250 = vrcp.f32 %v116_v9  ;;  %v128_v15 = vand.u32 2147483648, %v116_v9  ;;  %vm122_vm3 = vweird.f32 %v116_v9  ;;  %v126_v16 = vand.u32 2147483647, %v116_v9 }
  0xa3   :  { %v129_v18 = vor.u32 1.1754944e-38, %v128_v15  ;;  %vm127_vm5 = vcmp.eq.f32.partialorder %v126_v16, 8.507059e+37 }
  0xa7   :  { %v1251_v10 = vpop.eup %1250 }
  0xa8   :  { %v118_v11 = vmul.f32 %v1251_v10, %v116_v9  ;;  %vm123_vm2 = vweird.f32 %v1251_v10 }
  0xa9   :  { %vm124_vm4 = vmor %vm122_vm3, %vm123_vm2 }
  0xaa   :  { %v119_v12 = vsub.f32 1.0, %v118_v11 }
  0xac   :  { %v120_v13 = vmul.f32 %v1251_v10, %v119_v12 }
  0xae   :  { %v121_v14 = vadd.f32 %v1251_v10, %v120_v13 }
  0xb0   :  { %v125_v17 = vsel %vm124_vm4, %v1251_v10, %v121_v14 }
  0xb1   :  { %v130_v20 = vsel %vm127_vm5, %v129_v18, %v125_v17 }
 0x10f   :  { %v135_v19 = vpop.permute.xlu0 %134 }
 0x110   :  { %v137_v21 = vmul.f32 %v135_v19, %v130_v20 }
 0x112   :  { %1252 = vtanh.f32 %v137_v21  ;;  %196 = vrot.lane.b32.xlu2 %v137_v21, %s1457_s3 }
 0x118   :  { %v1253_v22 = vpop.eup %1252 }
 0x119   :  { %140 = vrot.lane.b32.xlu0 %v1253_v22, %s1458_s25 }
 0x16c   :  { %v197_v49 = vpop.permute.xlu2 %196 }
 0x18b   :  { %v141_v27 = vpop.permute.xlu0 %140 }
 0x18c   :  { %v143_v28 = vmul.f32 %v141_v27, %v130_v20  ;;  %v287_v20 = vld [vmem:[#allocation2 + $0x6] sm:$0x3] }
 0x18e   :  { %145 = vrot.lane.b32.xlu1 %v143_v28, %s1457_s3 }
 0x200   :  { %v146_v29 = vpop.permute.xlu1 %145 }
 0x201   :  { %149 = vst.msk [vmem:[#allocation3] sm:$0x3] %vm148_vm6, %v146_v29  ;;  %1203 = vmatmul.msk.f32.vlgmr.msra.gmra.mxu1 %vm151_vm7, %v146_v29 }
 0x27e   :  { %v171_v31 = vpop.f32.mrf.mxu1 }
 0x27f   :  { %v174_v32 = vadd.f32 %v171_v31, %v150_v30 }
 0x281   :  { %1254 = vtanh.f32 %v174_v32  ;;  %v1204_v34 = vmul.f32 -1.442695, %v174_v32 }
 0x283   :  { %1256 = vpow2.f32 %v1204_v34 }
 0x287   :  { %v1255_v33 = vpop.eup %1254 }
 0x288   :  { %201 = vrot.lane.b32.xlu1 %v1255_v33, %s1456_s1 }
 0x289   :  { %v1257_v35 = vpop.eup %1256 }
 0x28a   :  { %v178_v36 = vadd.f32 1.0, %v1257_v35 }
 0x28c   :  { %1258 = vrcp.f32 %v178_v36  ;;  %v190_v42 = vand.u32 2147483648, %v178_v36  ;;  %vm184_vm9 = vweird.f32 %v178_v36  ;;  %v188_v43 = vand.u32 2147483647, %v178_v36 }
 0x28e   :  { %v191_v45 = vor.u32 1.1754944e-38, %v190_v42  ;;  %vm189_vm11 = vcmp.eq.f32.partialorder %v188_v43, 8.507059e+37  ;;  %v66_v43 = vld [vmem:[%s1720_s0 + $0x8] sm:$0xff] }
 0x28f   :  { %1201 = vmatmul.msk.f32.gmra.mxu0 %vm72_vm1, %v66_v43 }
 0x292   :  { %v1259_v37 = vpop.eup %1258 }
 0x293   :  { %v180_v38 = vmul.f32 %v1259_v37, %v178_v36  ;;  %vm185_vm8 = vweird.f32 %v1259_v37 }
 0x294   :  { %vm186_vm10 = vmor %vm184_vm9, %vm185_vm8 }
 0x295   :  { %v181_v39 = vsub.f32 1.0, %v180_v38 }
 0x297   :  { %v182_v40 = vmul.f32 %v1259_v37, %v181_v39 }
 0x299   :  { %v183_v41 = vadd.f32 %v1259_v37, %v182_v40 }
 0x29b   :  { %v187_v44 = vsel %vm186_vm10, %v1259_v37, %v183_v41 }
 0x29c   :  { %v192_v47 = vsel %vm189_vm11, %v191_v45, %v187_v44 }
 0x29d   :  { %v199_v50 = vmul.f32 %v197_v49, %v192_v47  ;;  %v617_v49 = vld [vmem:[#allocation4] sm:$0xff] }
 0x2fa   :  { %v202_v46 = vpop.permute.xlu1 %201 }
 0x2fb   :  { %v204_v48 = vmul.f32 %v202_v46, %v192_v47  ;;  %v620_v46 = vld [vmem:[#allocation4 + $0x18] sm:$0xff] }
 0x2fc   :  { %645 = vmatpush.msra.mxu1 %v620_v46 }
 0x2fd   :  { %206 = vrot.lane.b32.xlu2 %v204_v48, %s1457_s3  ;;  %v618_v48 = vld [vmem:[#allocation4 + $0x8] sm:$0xff] }
 0x357   :  { %v207_v51 = vpop.permute.xlu2 %206 }
 0x358   :  { %v209_v52 = vadd.f32 %v207_v51, %v199_v50  ;;  %v103_v50 = vpop.f32.mrf.mxu0 }
 0x359   :  { %v104_v51 = vadd.f32 %v1526_v2, %v103_v50 }
 0x35a   :  { %1260 = vtanh.f32 %v209_v52 }
 0x35b   :  { %107 = vst [vmem:[#allocation2 + $0x8] sm:$0xff] %v104_v51 }
 0x360   :  { %v1261_v53 = vpop.eup %1260 }
 0x361   :  { %212 = vrot.lane.b32.xlu0 %v1261_v53, %s1456_s1 }
 0x3d3   :  { %v213_v54 = vpop.permute.xlu0 %212 }
 0x3d4   :  { %v215_v55 = vmul.f32 %v213_v54, %v192_v47  ;;  %v619_v47 = vld [vmem:[#allocation4 + $0x10] sm:$0xff]  ;;  %v353_v54 = vld [vmem:[#allocation2 + $0x8] sm:$0x3] }
 0x3d5   :  { %646 = vmatpush.msra.mxu1 %v619_v47 }
 0x3d6   :  { %217 = vrot.lane.b32.xlu1 %v215_v55, %s1457_s3 }
 0x3d7   :  { %647 = vmatpush.msra.mxu1 %v618_v48 }
 0x3d9   :  { %648 = vmatpush.msra.mxu1 %v617_v49 }
 0x448   :  { %v218_v56 = vpop.permute.xlu1 %217 }
 0x449   :  { %220 = vst.msk [vmem:[#allocation3 + $0x2] sm:$0x3] %vm148_vm6, %v218_v56  ;;  %1205 = vmatmul.msk.f32.vlgmr.msra.gmra.mxu2 %vm151_vm7, %v218_v56 }
 0x4cc   :  { %v241_v58 = vpop.f32.mrf.mxu2 }
 0x4cd   :  { %v244_v59 = vadd.f32 %v241_v58, %v221_v57  ;;  %v1577_v57 = vld [vmem:[%s1726_s6] ss:$0 sm:$0xff] }
 0x4cf   :  { %1262 = vtanh.f32 %v244_v59  ;;  %v1206_v61 = vmul.f32 -1.442695, %v244_v59 }
 0x4d1   :  { %1264 = vpow2.f32 %v1206_v61 }
 0x4d5   :  { %v1263_v60 = vpop.eup %1262 }
 0x4d6   :  { %267 = vrot.lane.b32.xlu2 %v1263_v60, %s1456_s1 }
 0x4d7   :  { %v1265_v62 = vpop.eup %1264 }
 0x4d8   :  { %v248_v63 = vadd.f32 1.0, %v1265_v62 }
 0x4da   :  { %1266 = vrcp.f32 %v248_v63  ;;  %v260_v6 = vand.u32 2147483648, %v248_v63  ;;  %vm254_vm13 = vweird.f32 %v248_v63  ;;  %v258_v7 = vand.u32 2147483647, %v248_v63 }
 0x4dc   :  { %v261_v9 = vor.u32 1.1754944e-38, %v260_v6  ;;  %vm259_vm15 = vcmp.eq.f32.partialorder %v258_v7, 8.507059e+37 }
 0x4e0   :  { %v1267_v0 = vpop.eup %1266 }
 0x4e1   :  { %v250_v1 = vmul.f32 %v1267_v0, %v248_v63  ;;  %vm255_vm12 = vweird.f32 %v1267_v0 }
 0x4e2   :  { %vm256_vm14 = vmor %vm254_vm13, %vm255_vm12 }
 0x4e3   :  { %v251_v3 = vsub.f32 1.0, %v250_v1 }
 0x4e5   :  { %v252_v4 = vmul.f32 %v1267_v0, %v251_v3 }
 0x4e7   :  { %v253_v5 = vadd.f32 %v1267_v0, %v252_v4 }
 0x4e9   :  { %v257_v8 = vsel %vm256_vm14, %v1267_v0, %v253_v5 }
 0x4ea   :  { %v262_v11 = vsel %vm259_vm15, %v261_v9, %v257_v8 }
 0x4eb   :  { %v265_v13 = vmul.f32 %v262_v11, %v209_v52 }
 0x530   :  { %v268_v10 = vpop.permute.xlu2 %267 }
 0x531   :  { %v270_v12 = vmul.f32 %v268_v10, %v262_v11 }
 0x533   :  { %272 = vrot.lane.b32.xlu0 %v270_v12, %s1457_s3 }
 0x5a5   :  { %v273_v14 = vpop.permute.xlu0 %272 }
 0x5a6   :  { %v275_v15 = vadd.f32 %v273_v14, %v265_v13 }
 0x5a8   :  { %1268 = vtanh.f32 %v275_v15 }
 0x5ae   :  { %v1269_v16 = vpop.eup %1268 }
 0x5af   :  { %278 = vrot.lane.b32.xlu1 %v1269_v16, %s1456_s1 }
 0x621   :  { %v279_v17 = vpop.permute.xlu1 %278 }
 0x622   :  { %v281_v18 = vmul.f32 %v279_v17, %v262_v11 }
 0x624   :  { %283 = vrot.lane.b32.xlu2 %v281_v18, %s1457_s3 }
 0x67e   :  { %v284_v19 = vpop.permute.xlu2 %283 }
 0x67f   :  { %286 = vst.msk [vmem:[#allocation3 + $0x4] sm:$0x3] %vm148_vm6, %v284_v19  ;;  %1207 = vmatmul.msk.f32.vlgmr.msra.gmra.mxu3 %vm151_vm7, %v284_v19 }
 0x702   :  { %v307_v21 = vpop.f32.mrf.mxu3 }
 0x703   :  { %v310_v22 = vadd.f32 %v307_v21, %v287_v20 }
 0x705   :  { %1270 = vtanh.f32 %v310_v22  ;;  %v1208_v24 = vmul.f32 -1.442695, %v310_v22 }
 0x707   :  { %1272 = vpow2.f32 %v1208_v24 }
 0x70b   :  { %v1271_v23 = vpop.eup %1270 }
 0x70c   :  { %333 = vrot.lane.b32.xlu0 %v1271_v23, %s1456_s1 }
 0x70d   :  { %v1273_v25 = vpop.eup %1272 }
 0x70e   :  { %v314_v26 = vadd.f32 1.0, %v1273_v25 }
 0x710   :  { %1274 = vrcp.f32 %v314_v26  ;;  %v326_v32 = vand.u32 2147483648, %v314_v26  ;;  %vm320_vm2 = vweird.f32 %v314_v26  ;;  %v324_v33 = vand.u32 2147483647, %v314_v26 }
 0x712   :  { %v327_v35 = vor.u32 1.1754944e-38, %v326_v32  ;;  %vm325_vm4 = vcmp.eq.f32.partialorder %v324_v33, 8.507059e+37 }
 0x716   :  { %v1275_v27 = vpop.eup %1274 }
 0x717   :  { %v316_v28 = vmul.f32 %v1275_v27, %v314_v26  ;;  %vm321_vm0 = vweird.f32 %v1275_v27 }
 0x718   :  { %vm322_vm3 = vmor %vm320_vm2, %vm321_vm0 }
 0x719   :  { %v317_v29 = vsub.f32 1.0, %v316_v28 }
 0x71b   :  { %v318_v30 = vmul.f32 %v1275_v27, %v317_v29 }
 0x71d   :  { %v319_v31 = vadd.f32 %v1275_v27, %v318_v30 }
 0x71f   :  { %v323_v34 = vsel %vm322_vm3, %v1275_v27, %v319_v31 }
 0x720   :  { %v328_v37 = vsel %vm325_vm4, %v327_v35, %v323_v34 }
 0x721   :  { %v331_v39 = vmul.f32 %v328_v37, %v275_v15 }
 0x77e   :  { %v334_v36 = vpop.permute.xlu0 %333 }
 0x77f   :  { %v336_v38 = vmul.f32 %v334_v36, %v328_v37 }
 0x781   :  { %338 = vrot.lane.b32.xlu1 %v336_v38, %s1457_s3  ;;  %v1591_v38 = vld [vmem:[#allocation7 + $0x18] sm:$0xff] }
 0x782   :  { %712 = vmatpush.msra.mxu2 %v1591_v38  ;;  %780 = vmatpush.msra.mxu3 %v1591_v38 }
 0x783   :  { %844 = vmatpush.msra.mxu0 %v1591_v38 }
 0x7f3   :  { %v339_v40 = vpop.permute.xlu1 %338 }
 0x7f4   :  { %v1561_v41 = vadd.f32 %v339_v40, %v331_v39  ;;  %v1593_v39 = vld [vmem:[#allocation7 + $0x10] sm:$0xff]  ;;  %v1597_v40 = vld [vmem:[#allocation7 + $0x8] sm:$0xff] }
 0x7f5   :  { %713 = vmatpush.msra.mxu2 %v1593_v39  ;;  %781 = vmatpush.msra.mxu3 %v1593_v39 }
 0x7f6   :  { %1276 = vtanh.f32 %v1561_v41  ;;  %845 = vmatpush.msra.mxu0 %v1593_v39 }
 0x7f7   :  { %714 = vmatpush.msra.mxu2 %v1597_v40  ;;  %782 = vmatpush.msra.mxu3 %v1597_v40 }
 0x7f8   :  { %846 = vmatpush.msra.mxu0 %v1597_v40 }
 0x7fc   :  { %v1277_v42 = vpop.eup %1276 }
 0x7fd   :  { %344 = vrot.lane.b32.xlu2 %v1277_v42, %s1456_s1 }
 0x857   :  { %v345_v44 = vpop.permute.xlu2 %344 }
 0x858   :  { %v347_v45 = vmul.f32 %v345_v44, %v328_v37  ;;  %v419_v44 = vld [vmem:[#allocation2 + $0xa] sm:$0x3] }
 0x85a   :  { %349 = vrot.lane.b32.xlu0 %v347_v45, %s1457_s3 }
 0x8cc   :  { %v350_v52 = vpop.permute.xlu0 %349 }
 0x8cd   :  { %352 = vst.msk [vmem:[#allocation3 + $0x6] sm:$0x3] %vm148_vm6, %v350_v52  ;;  %1209 = vmatmul.msk.f32.vlgmr.msrb.gmra.mxu1 %vm151_vm7, %v350_v52 }
 0x8ce   :  { %1100 = vmatpush.msrb.mxu1 %v1591_v38 }
 0x8d0   :  { %1101 = vmatpush.msrb.mxu1 %v1593_v39 }
 0x8d2   :  { %1102 = vmatpush.msrb.mxu1 %v1597_v40 }
 0x8d4   :  { %v622_v53 = vld [vmem:[#allocation3] sm:$0xff] }
 0x8d5   :  { %1217 = vmatmul.msk.f32.vlgmr.msra.gmra.mxu1 %vm151_vm7, %v622_v53 }
 0x94a   :  { %v373_v55 = vpop.f32.mrf.mxu1 }
 0x94b   :  { %v376_v56 = vadd.f32 %v373_v55, %v353_v54 }
 0x94d   :  { %1278 = vtanh.f32 %v376_v56  ;;  %v1210_v62 = vmul.f32 -1.442695, %v376_v56 }
 0x952   :  { %v650_v58 = vpop.f32.mrf.mxu1 }
 0x953   :  { %v1279_v2 = vpop.eup %1278  ;;  %v651_v59 = vadd.f32 %v1577_v57, %v650_v58 }
 0x954   :  { %399 = vrot.lane.b32.xlu1 %v1279_v2, %s1456_s1 }
 0x955   :  { %656 = vst [vmem:[#allocation2] sm:$0xff] %v651_v59 }
 0x95c   :  { %v662_v60 = vld [vmem:[#allocation2] sm:$0x3]  ;;  %v694_v47 = vld [vmem:[#allocation2 + $0x2] sm:$0x3] }
 0x95d   :  { %1280 = vtanh.f32 %v662_v60  ;;  %v1219_v1 = vmul.f32 -1.442695, %v662_v60 }
 0x95e   :  { %1282 = vpow2.f32 %v1210_v62 }
 0x963   :  { %v1281_v61 = vpop.eup %1280 }
 0x964   :  { %684 = vrot.lane.b32.xlu0 %v1281_v61, %s1456_s1  ;;  %v1283_v63 = vpop.eup %1282 }
 0x965   :  { %v380_v0 = vadd.f32 1.0, %v1283_v63 }
 0x967   :  { %1284 = vrcp.f32 %v380_v0  ;;  %v392_v11 = vand.u32 2147483648, %v380_v0  ;;  %vm386_vm5 = vweird.f32 %v380_v0  ;;  %v390_v12 = vand.u32 2147483647, %v380_v0 }
 0x968   :  { %1286 = vpow2.f32 %v1219_v1 }
 0x969   :  { %v393_v15 = vor.u32 1.1754944e-38, %v392_v11  ;;  %vm391_vm9 = vcmp.eq.f32.partialorder %v390_v12, 8.507059e+37 }
 0x96d   :  { %v1285_v3 = vpop.eup %1284 }
 0x96e   :  { %v1287_v4 = vpop.eup %1286  ;;  %v382_v5 = vmul.f32 %v1285_v3, %v380_v0  ;;  %vm387_vm1 = vweird.f32 %v1285_v3 }
 0x96f   :  { %v666_v6 = vadd.f32 1.0, %v1287_v4  ;;  %vm388_vm8 = vmor %vm386_vm5, %vm387_vm1 }
 0x970   :  { %v383_v7 = vsub.f32 1.0, %v382_v5 }
 0x971   :  { %1288 = vrcp.f32 %v666_v6  ;;  %v678_v22 = vand.u32 2147483648, %v666_v6  ;;  %vm672_vm11 = vweird.f32 %v666_v6  ;;  %v676_v23 = vand.u32 2147483647, %v666_v6 }
 0x972   :  { %v384_v8 = vmul.f32 %v1285_v3, %v383_v7 }
 0x973   :  { %v679_v25 = vor.u32 1.1754944e-38, %v678_v22  ;;  %vm677_vm13 = vcmp.eq.f32.partialorder %v676_v23, 8.507059e+37 }
 0x974   :  { %v385_v9 = vadd.f32 %v1285_v3, %v384_v8 }
 0x976   :  { %v389_v13 = vsel %vm388_vm8, %v1285_v3, %v385_v9 }
 0x977   :  { %v1289_v10 = vpop.eup %1288  ;;  %v394_v17 = vsel %vm391_vm9, %v393_v15, %v389_v13 }
 0x978   :  { %v668_v14 = vmul.f32 %v1289_v10, %v666_v6  ;;  %vm673_vm10 = vweird.f32 %v1289_v10  ;;  %v397_v30 = vmul.f32 %v394_v17, %v1561_v41  ;;  %v1603_v41 = vld [vmem:[#allocation7] sm:$0xff] }
 0x979   :  { %vm674_vm12 = vmor %vm672_vm11, %vm673_vm10  ;;  %715 = vmatpush.msra.mxu2 %v1603_v41  ;;  %783 = vmatpush.msra.mxu3 %v1603_v41 }
 0x97a   :  { %v669_v19 = vsub.f32 1.0, %v668_v14  ;;  %847 = vmatpush.msra.mxu0 %v1603_v41  ;;  %1103 = vmatpush.msrb.mxu1 %v1603_v41 }
 0x97c   :  { %v670_v20 = vmul.f32 %v1289_v10, %v669_v19 }
 0x97e   :  { %v671_v21 = vadd.f32 %v1289_v10, %v670_v20 }
 0x980   :  { %v675_v24 = vsel %vm674_vm12, %v1289_v10, %v671_v21 }
 0x981   :  { %v680_v27 = vsel %vm677_vm13, %v679_v25, %v675_v24 }
 0x9c6   :  { %v400_v16 = vpop.permute.xlu1 %399 }
 0x9c7   :  { %v402_v18 = vmul.f32 %v400_v16, %v394_v17 }
 0x9c9   :  { %404 = vrot.lane.b32.xlu2 %v402_v18, %s1457_s3 }
 0x9d6   :  { %v685_v26 = vpop.permute.xlu0 %684 }
 0x9d7   :  { %v687_v28 = vmul.f32 %v685_v26, %v680_v27 }
 0x9d9   :  { %1290 = vtanh.f32 %v687_v28 }
 0x9df   :  { %v1291_v29 = vpop.eup %1290 }
 0x9e0   :  { %690 = vrot.lane.b32.xlu2 %v1291_v29, %s1458_s25  ;;  %s1188_s25 = sshll.u32 %s1729_s9, 4  ;;  %s1189_s25 = int_to_ptr.hbm [resolvable:$true] %s1188_s25 }
 0xa23   :  { %v405_v31 = vpop.permute.xlu2 %404 }
 0xa24   :  { %v1585_v32 = vadd.f32 %v405_v31, %v397_v30 }
 0xa26   :  { %1292 = vtanh.f32 %v1585_v32 }
 0xa2c   :  { %v1293_v33 = vpop.eup %1292 }
 0xa2d   :  { %410 = vrot.lane.b32.xlu1 %v1293_v33, %s1456_s1 }
 0xa3a   :  { %v691_v34 = vpop.permute.xlu2 %690 }
 0xa3b   :  { %v693_v35 = vmul.f32 %v691_v34, %v680_v27  ;;  %v485_v34 = vld [vmem:[#allocation2 + $0xc] sm:$0x3] }
 0xa3d   :  { %696 = vrot.lane.b32.xlu1 %v693_v35, %s1457_s3 }
 0xa9f   :  { %v411_v36 = vpop.permute.xlu1 %410 }
 0xaa0   :  { %v413_v37 = vmul.f32 %v411_v36, %v394_v17 }
 0xaa2   :  { %415 = vrot.lane.b32.xlu0 %v413_v37, %s1457_s3  ;;  %v762_v37 = vld [vmem:[#allocation2 + $0x4] sm:$0x3] }
 0xaaf   :  { %v697_v43 = vpop.permute.xlu1 %696 }
 0xb14   :  { %v416_v42 = vpop.permute.xlu0 %415 }
 0xb15   :  { %418 = vst.msk [vmem:[#allocation3 + $0x8] sm:$0x3] %vm148_vm6, %v416_v42  ;;  %1211 = vmatmul.msk.f32.vlgmr.msrb.gmra.mxu2 %vm151_vm7, %v416_v42 }
 0xb16   :  { %908 = vmatpush.msrb.mxu2 %v1591_v38 }
 0xb18   :  { %909 = vmatpush.msrb.mxu2 %v1593_v39 }
 0xb1a   :  { %910 = vmatpush.msrb.mxu2 %v1597_v40 }
 0xb1c   :  { %911 = vmatpush.msrb.mxu2 %v1603_v41 }
 0xb1d   :  { %1220 = vmatmul.msk.f32.vlgmr.msra.gmra.mxu2 %vm151_vm7, %v697_v43 }
 0xb98   :  { %v439_v45 = vpop.f32.mrf.mxu2 }
 0xb99   :  { %v442_v46 = vadd.f32 %v439_v45, %v419_v44 }
 0xb9b   :  { %1294 = vtanh.f32 %v442_v46  ;;  %v1212_v52 = vmul.f32 -1.442695, %v442_v46 }
 0xba0   :  { %v717_v48 = vpop.f32.mrf.mxu2 }
 0xba1   :  { %v1295_v49 = vpop.eup %1294  ;;  %v720_v50 = vadd.f32 %v717_v48, %v694_v47 }
 0xba2   :  { %465 = vrot.lane.b32.xlu2 %v1295_v49, %s1456_s1 }
 0xba3   :  { %1296 = vtanh.f32 %v720_v50  ;;  %v1221_v2 = vmul.f32 -1.442695, %v720_v50 }
 0xba4   :  { %1298 = vpow2.f32 %v1212_v52 }
 0xba9   :  { %v1297_v51 = vpop.eup %1296 }
 0xbaa   :  { %742 = vrot.lane.b32.xlu2 %v687_v28, %s1457_s3  ;;  %747 = vrot.lane.b32.xlu0 %v1297_v51, %s1456_s1  ;;  %v1299_v53 = vpop.eup %1298 }
 0xbab   :  { %v446_v54 = vadd.f32 1.0, %v1299_v53 }
 0xbad   :  { %1300 = vrcp.f32 %v446_v54  ;;  %v458_v61 = vand.u32 2147483648, %v446_v54  ;;  %vm452_vm15 = vweird.f32 %v446_v54  ;;  %v456_v62 = vand.u32 2147483647, %v446_v54 }
 0xbae   :  { %1302 = vpow2.f32 %v1221_v2 }
 0xbaf   :  { %v459_v1 = vor.u32 1.1754944e-38, %v458_v61  ;;  %vm457_vm2 = vcmp.eq.f32.partialorder %v456_v62, 8.507059e+37 }
 0xbb3   :  { %v1301_v55 = vpop.eup %1300 }
 0xbb4   :  { %v448_v56 = vmul.f32 %v1301_v55, %v446_v54  ;;  %vm453_vm14 = vweird.f32 %v1301_v55  ;;  %v1303_v63 = vpop.eup %1302 }
 0xbb5   :  { %vm454_vm0 = vmor %vm452_vm15, %vm453_vm14  ;;  %v724_v3 = vadd.f32 1.0, %v1303_v63 }
 0xbb6   :  { %v449_v58 = vsub.f32 1.0, %v448_v56 }
 0xbb7   :  { %1304 = vrcp.f32 %v724_v3  ;;  %v736_v12 = vand.u32 2147483648, %v724_v3  ;;  %vm730_vm4 = vweird.f32 %v724_v3  ;;  %v734_v13 = vand.u32 2147483647, %v724_v3 }
 0xbb8   :  { %v450_v59 = vmul.f32 %v1301_v55, %v449_v58 }
 0xbb9   :  { %v737_v15 = vor.u32 1.1754944e-38, %v736_v12  ;;  %vm735_vm5 = vcmp.eq.f32.partialorder %v734_v13, 8.507059e+37 }
 0xbba   :  { %v451_v60 = vadd.f32 %v1301_v55, %v450_v59 }
 0xbbc   :  { %v455_v0 = vsel %vm454_vm0, %v1301_v55, %v451_v60 }
 0xbbd   :  { %v460_v4 = vsel %vm457_vm2, %v459_v1, %v455_v0  ;;  %v1305_v7 = vpop.eup %1304 }
 0xbbe   :  { %v726_v8 = vmul.f32 %v1305_v7, %v724_v3  ;;  %vm731_vm3 = vweird.f32 %v1305_v7  ;;  %v463_v19 = vmul.f32 %v460_v4, %v1585_v32 }
 0xbbf   :  { %vm732_vm1 = vmor %vm730_vm4, %vm731_vm3 }
 0xbc0   :  { %v727_v9 = vsub.f32 1.0, %v726_v8 }
 0xbc2   :  { %v728_v10 = vmul.f32 %v1305_v7, %v727_v9 }
 0xbc4   :  { %v729_v11 = vadd.f32 %v1305_v7, %v728_v10 }
 0xbc6   :  { %v733_v14 = vsel %vm732_vm1, %v1305_v7, %v729_v11 }
 0xbc7   :  { %v738_v16 = vsel %vm735_vm5, %v737_v15, %v733_v14 }
 0xbfc   :  { %v466_v5 = vpop.permute.xlu2 %465 }
 0xbfd   :  { %v468_v6 = vmul.f32 %v466_v5, %v460_v4 }
 0xbff   :  { %470 = vrot.lane.b32.xlu1 %v468_v6, %s1457_s3 }
 0xc04   :  { %v743_v23 = vpop.permute.xlu2 %742 }
 0xc05   :  { %v745_v24 = vmul.f32 %v743_v23, %v738_v16 }
 0xc1c   :  { %v748_v17 = vpop.permute.xlu0 %747 }
 0xc1d   :  { %v750_v18 = vmul.f32 %v748_v17, %v738_v16 }
 0xc1f   :  { %752 = vrot.lane.b32.xlu0 %v750_v18, %s1457_s3 }
 0xc71   :  { %v471_v20 = vpop.permute.xlu1 %470 }
 0xc72   :  { %v1628_v21 = vadd.f32 %v471_v20, %v463_v19 }
 0xc74   :  { %1306 = vtanh.f32 %v1628_v21 }
 0xc7a   :  { %v1307_v22 = vpop.eup %1306 }
 0xc7b   :  { %476 = vrot.lane.b32.xlu1 %v1307_v22, %s1456_s1 }
 0xc91   :  { %v753_v25 = vpop.permute.xlu0 %752 }
 0xc92   :  { %v1632_v26 = vadd.f32 %v753_v25, %v745_v24 }
 0xc94   :  { %1308 = vtanh.f32 %v1632_v26 }
 0xc9a   :  { %v1309_v27 = vpop.eup %1308 }
 0xc9b   :  { %758 = vrot.lane.b32.xlu2 %v1309_v27, %s1456_s1  ;;  %v551_v27 = vld [vmem:[#allocation2 + $0xe] sm:$0x3] }
 0xced   :  { %v477_v28 = vpop.permute.xlu1 %476 }
 0xcee   :  { %v479_v29 = vmul.f32 %v477_v28, %v460_v4 }
 0xcf0   :  { %481 = vrot.lane.b32.xlu0 %v479_v29, %s1457_s3 }
 0xcf5   :  { %v759_v30 = vpop.permute.xlu2 %758 }
 0xcf6   :  { %v761_v31 = vmul.f32 %v759_v30, %v738_v16 }
 0xcf8   :  { %764 = vrot.lane.b32.xlu1 %v761_v31, %s1457_s3  ;;  %v826_v31 = vld [vmem:[#allocation2 + $0x6] sm:$0x3] }
 0xd62   :  { %v482_v32 = vpop.permute.xlu0 %481 }
 0xd63   :  { %484 = vst.msk [vmem:[#allocation3 + $0xa] sm:$0x3] %vm148_vm6, %v482_v32  ;;  %1213 = vmatmul.msk.f32.vlgmr.msrb.gmra.mxu3 %vm151_vm7, %v482_v32 }
 0xd64   :  { %972 = vmatpush.msrb.mxu3 %v1591_v38 }
 0xd66   :  { %973 = vmatpush.msrb.mxu3 %v1593_v39 }
 0xd68   :  { %974 = vmatpush.msrb.mxu3 %v1597_v40 }
 0xd6a   :  { %v765_v33 = vpop.permute.xlu1 %764  ;;  %975 = vmatpush.msrb.mxu3 %v1603_v41 }
 0xd6b   :  { %1222 = vmatmul.msk.f32.vlgmr.msra.gmra.mxu3 %vm151_vm7, %v765_v33 }
 0xde6   :  { %v505_v35 = vpop.f32.mrf.mxu3 }
 0xde7   :  { %v508_v36 = vadd.f32 %v505_v35, %v485_v34 }
 0xde9   :  { %1310 = vtanh.f32 %v508_v36  ;;  %v1214_v46 = vmul.f32 -1.442695, %v508_v36 }
 0xdee   :  { %v785_v42 = vpop.f32.mrf.mxu3 }
 0xdef   :  { %v1311_v43 = vpop.eup %1310  ;;  %v788_v44 = vadd.f32 %v785_v42, %v762_v37 }
 0xdf0   :  { %531 = vrot.lane.b32.xlu2 %v1311_v43, %s1456_s1 }
 0xdf1   :  { %1312 = vtanh.f32 %v788_v44  ;;  %v1223_v52 = vmul.f32 -1.442695, %v788_v44 }
 0xdf2   :  { %1314 = vpow2.f32 %v1214_v46 }
 0xdf7   :  { %v1313_v45 = vpop.eup %1312 }
 0xdf8   :  { %811 = vrot.lane.b32.xlu0 %v1313_v45, %s1456_s1  ;;  %v1315_v47 = vpop.eup %1314 }
 0xdf9   :  { %v512_v48 = vadd.f32 1.0, %v1315_v47 }
 0xdfb   :  { %1316 = vrcp.f32 %v512_v48  ;;  %v524_v55 = vand.u32 2147483648, %v512_v48  ;;  %vm518_vm9 = vweird.f32 %v512_v48  ;;  %v522_v56 = vand.u32 2147483647, %v512_v48 }
 0xdfc   :  { %1318 = vpow2.f32 %v1223_v52 }
 0xdfd   :  { %v525_v59 = vor.u32 1.1754944e-38, %v524_v55  ;;  %vm523_vm11 = vcmp.eq.f32.partialorder %v522_v56, 8.507059e+37 }
 0xe01   :  { %v1317_v49 = vpop.eup %1316 }
 0xe02   :  { %v514_v50 = vmul.f32 %v1317_v49, %v512_v48  ;;  %vm519_vm8 = vweird.f32 %v1317_v49  ;;  %v1319_v58 = vpop.eup %1318 }
 0xe03   :  { %vm520_vm10 = vmor %vm518_vm9, %vm519_vm8  ;;  %v792_v60 = vadd.f32 1.0, %v1319_v58 }
 0xe04   :  { %v515_v51 = vsub.f32 1.0, %v514_v50 }
 0xe05   :  { %1320 = vrcp.f32 %v792_v60  ;;  %v804_v6 = vand.u32 2147483648, %v792_v60  ;;  %vm798_vm13 = vweird.f32 %v792_v60  ;;  %v802_v7 = vand.u32 2147483647, %v792_v60 }
 0xe06   :  { %v516_v53 = vmul.f32 %v1317_v49, %v515_v51 }
 0xe07   :  { %v805_v9 = vor.u32 1.1754944e-38, %v804_v6  ;;  %vm803_vm15 = vcmp.eq.f32.partialorder %v802_v7, 8.507059e+37 }
 0xe08   :  { %v517_v54 = vadd.f32 %v1317_v49, %v516_v53 }
 0xe0a   :  { %v521_v2 = vsel %vm520_vm10, %v1317_v49, %v517_v54 }
 0xe0b   :  { %v526_v61 = vsel %vm523_vm11, %v525_v59, %v521_v2  ;;  %v1321_v0 = vpop.eup %1320 }
 0xe0c   :  { %v794_v1 = vmul.f32 %v1321_v0, %v792_v60  ;;  %vm799_vm12 = vweird.f32 %v1321_v0  ;;  %v529_v13 = vmul.f32 %v526_v61, %v1628_v21 }
 0xe0d   :  { %vm800_vm14 = vmor %vm798_vm13, %vm799_vm12 }
 0xe0e   :  { %v795_v3 = vsub.f32 1.0, %v794_v1 }
 0xe10   :  { %v796_v4 = vmul.f32 %v1321_v0, %v795_v3 }
 0xe12   :  { %v797_v5 = vadd.f32 %v1321_v0, %v796_v4 }
 0xe14   :  { %v801_v8 = vsel %vm800_vm14, %v1321_v0, %v797_v5 }
 0xe15   :  { %v806_v11 = vsel %vm803_vm15, %v805_v9, %v801_v8 }
 0xe16   :  { %v809_v16 = vmul.f32 %v806_v11, %v1632_v26 }
 0xe4a   :  { %v532_v62 = vpop.permute.xlu2 %531 }
 0xe4b   :  { %v534_v63 = vmul.f32 %v532_v62, %v526_v61 }
 0xe4d   :  { %536 = vrot.lane.b32.xlu1 %v534_v63, %s1457_s3 }
 0xe6a   :  { %v812_v10 = vpop.permute.xlu0 %811 }
 0xe6b   :  { %v814_v12 = vmul.f32 %v812_v10, %v806_v11 }
 0xe6d   :  { %816 = vrot.lane.b32.xlu2 %v814_v12, %s1457_s3 }
 0xebf   :  { %v537_v14 = vpop.permute.xlu1 %536 }
 0xec0   :  { %v1650_v15 = vadd.f32 %v537_v14, %v529_v13 }
 0xec2   :  { %1322 = vtanh.f32 %v1650_v15 }
 0xec7   :  { %v817_v17 = vpop.permute.xlu2 %816 }
 0xec8   :  { %v1323_v18 = vpop.eup %1322  ;;  %v1654_v19 = vadd.f32 %v817_v17, %v809_v16 }
 0xec9   :  { %542 = vrot.lane.b32.xlu0 %v1323_v18, %s1456_s1 }
 0xeca   :  { %1324 = vtanh.f32 %v1654_v19 }
 0xed0   :  { %v1325_v20 = vpop.eup %1324 }
 0xed1   :  { %822 = vrot.lane.b32.xlu1 %v1325_v20, %s1456_s1 }
 0xf3b   :  { %v543_v22 = vpop.permute.xlu0 %542 }
 0xf3c   :  { %v545_v21 = vmul.f32 %v543_v22, %v526_v61 }
 0xf3e   :  { %547 = vrot.lane.b32.xlu2 %v545_v21, %s1457_s3 }
 0xf43   :  { %v823_v23 = vpop.permute.xlu1 %822 }
 0xf44   :  { %v825_v24 = vmul.f32 %v823_v23, %v806_v11 }
 0xf46   :  { %828 = vrot.lane.b32.xlu0 %v825_v24, %s1457_s3 }
 0xf98   :  { %v548_v25 = vpop.permute.xlu2 %547 }
 0xf99   :  { %550 = vst.msk [vmem:[#allocation3 + $0xc] sm:$0x3] %vm148_vm6, %v548_v25  ;;  %1215 = vmatmul.msk.f32.vlgmr.msrb.gmra.mxu0 %vm151_vm7, %v548_v25 }
 0xf9a   :  { %1036 = vmatpush.msrb.mxu0 %v1591_v38 }
 0xf9c   :  { %1037 = vmatpush.msrb.mxu0 %v1593_v39 }
 0xf9e   :  { %1038 = vmatpush.msrb.mxu0 %v1597_v40 }
 0xfa0   :  { %1039 = vmatpush.msrb.mxu0 %v1603_v41 }
 0xfb8   :  { %v829_v26 = vpop.permute.xlu0 %828 }
 0xfb9   :  { %1224 = vmatmul.msk.f32.vlgmr.msra.gmra.mxu0 %vm151_vm7, %v829_v26 }
0x1016   :  { %v571_v28 = vpop.f32.mrf.mxu0 }
0x1017   :  { %v574_v29 = vadd.f32 %v571_v28, %v551_v27 }
0x1019   :  { %1326 = vtanh.f32 %v574_v29  ;;  %v1216_v39 = vmul.f32 -1.442695, %v574_v29 }
0x101f   :  { %v1327_v30 = vpop.eup %1326 }
0x1020   :  { %597 = vrot.lane.b32.xlu1 %v1327_v30, %s1456_s1 }
0x1036   :  { %v849_v32 = vpop.f32.mrf.mxu0 }
0x1037   :  { %v852_v33 = vadd.f32 %v849_v32, %v826_v31 }
0x1039   :  { %1328 = vtanh.f32 %v852_v33  ;;  %v1225_v40 = vmul.f32 -1.442695, %v852_v33 }
0x103a   :  { %1330 = vpow2.f32 %v1216_v39 }
0x103b   :  { %1332 = vpow2.f32 %v1225_v40 }
0x103f   :  { %v1329_v38 = vpop.eup %1328 }
0x1040   :  { %875 = vrot.lane.b32.xlu2 %v1329_v38, %s1456_s1  ;;  %v1331_v41 = vpop.eup %1330 }
0x1041   :  { %v578_v34 = vadd.f32 1.0, %v1331_v41  ;;  %v1333_v35 = vpop.eup %1332 }
0x1042   :  { %v856_v36 = vadd.f32 1.0, %v1333_v35 }
0x1043   :  { %1334 = vrcp.f32 %v578_v34  ;;  %v590_v49 = vand.u32 2147483648, %v578_v34  ;;  %vm584_vm2 = vweird.f32 %v578_v34  ;;  %v588_v50 = vand.u32 2147483647, %v578_v34 }
0x1044   :  { %1336 = vrcp.f32 %v856_v36  ;;  %v868_v2 = vand.u32 2147483648, %v856_v36  ;;  %vm862_vm5 = vweird.f32 %v856_v36  ;;  %v866_v59 = vand.u32 2147483647, %v856_v36 }
0x1045   :  { %v591_v53 = vor.u32 1.1754944e-38, %v590_v49  ;;  %vm589_vm4 = vcmp.eq.f32.partialorder %v588_v50, 8.507059e+37 }
0x1046   :  { %v869_v61 = vor.u32 1.1754944e-38, %v868_v2  ;;  %vm867_vm9 = vcmp.eq.f32.partialorder %v866_v59, 8.507059e+37 }
0x1049   :  { %v1335_v37 = vpop.eup %1334 }
0x104a   :  { %v580_v42 = vmul.f32 %v1335_v37, %v578_v34  ;;  %v1337_v44 = vpop.eup %1336  ;;  %vm585_vm0 = vweird.f32 %v1335_v37 }
0x104b   :  { %v858_v46 = vmul.f32 %v1337_v44, %v856_v36  ;;  %vm586_vm3 = vmor %vm584_vm2, %vm585_vm0  ;;  %vm863_vm1 = vweird.f32 %v1337_v44 }
0x104c   :  { %v581_v43 = vsub.f32 1.0, %v580_v42  ;;  %vm864_vm8 = vmor %vm862_vm5, %vm863_vm1 }
0x104d   :  { %v859_v48 = vsub.f32 1.0, %v858_v46 }
0x104e   :  { %v582_v45 = vmul.f32 %v1335_v37, %v581_v43 }
0x104f   :  { %v860_v52 = vmul.f32 %v1337_v44, %v859_v48 }
0x1050   :  { %v583_v47 = vadd.f32 %v1335_v37, %v582_v45 }
0x1051   :  { %v861_v58 = vadd.f32 %v1337_v44, %v860_v52 }
0x1052   :  { %v587_v51 = vsel %vm586_vm3, %v1335_v37, %v583_v47 }
0x1053   :  { %v592_v55 = vsel %vm589_vm4, %v591_v53, %v587_v51  ;;  %v865_v60 = vsel %vm864_vm8, %v1337_v44, %v861_v58 }
0x1054   :  { %v870_v63 = vsel %vm867_vm9, %v869_v61, %v865_v60  ;;  %v595_v1 = vmul.f32 %v592_v55, %v1650_v15 }
0x1055   :  { %v873_v5 = vmul.f32 %v870_v63, %v1654_v19 }
0x1092   :  { %v598_v54 = vpop.permute.xlu1 %597 }
0x1093   :  { %v600_v56 = vmul.f32 %v598_v54, %v592_v55 }
0x1095   :  { %602 = vrot.lane.b32.xlu0 %v600_v56, %s1457_s3 }
0x109a   :  { %v876_v62 = vpop.permute.xlu2 %875 }
0x109b   :  { %v878_v0 = vmul.f32 %v876_v62, %v870_v63 }
0x109d   :  { %880 = vrot.lane.b32.xlu1 %v878_v0, %s1457_s3 }
0x1107   :  { %v603_v3 = vpop.permute.xlu0 %602 }
0x1108   :  { %v605_v4 = vadd.f32 %v603_v3, %v595_v1 }
0x110a   :  { %1338 = vtanh.f32 %v605_v4 }
0x110f   :  { %v881_v6 = vpop.permute.xlu1 %880 }
0x1110   :  { %v1339_v7 = vpop.eup %1338  ;;  %v883_v8 = vadd.f32 %v881_v6, %v873_v5 }
0x1111   :  { %608 = vrot.lane.b32.xlu2 %v1339_v7, %s1456_s1 }
0x1112   :  { %1340 = vtanh.f32 %v883_v8 }
0x1118   :  { %v1341_v9 = vpop.eup %1340 }
0x1119   :  { %886 = vrot.lane.b32.xlu0 %v1341_v9, %s1456_s1 }
0x116b   :  { %v609_v10 = vpop.permute.xlu2 %608 }
0x116c   :  { %v611_v11 = vmul.f32 %v609_v10, %v592_v55 }
0x116e   :  { %613 = vrot.lane.b32.xlu1 %v611_v11, %s1457_s3 }
0x118b   :  { %v887_v12 = vpop.permute.xlu0 %886 }
0x118c   :  { %v889_v13 = vmul.f32 %v887_v12, %v870_v63 }
0x118e   :  { %892 = vrot.lane.b32.xlu2 %v889_v13, %s1457_s3 }
0x11e0   :  { %v614_v14 = vpop.permute.xlu1 %613 }
0x11e1   :  { %616 = vst.msk [vmem:[#allocation3 + $0xe] sm:$0x3] %vm148_vm6, %v614_v14 }
0x11e8   :  { %v893_v15 = vpop.permute.xlu2 %892  ;;  %v623_v16 = vld [vmem:[#allocation3 + $0x8] sm:$0xff] }
0x11e9   :  { %1218 = vmatmul.msk.f32.gmra.mxu1 %vm151_vm7, %v623_v16  ;;  %1226 = vmatmul.msk.f32.vlgmr.msrb.gmra.mxu2 %vm151_vm7, %v893_v15 }
0x1266   :  { %v653_v17 = vpop.f32.mrf.mxu1 }
0x1267   :  { %v654_v18 = vadd.f32 %v1577_v57, %v653_v17 }
0x1269   :  { %657 = vst [vmem:[#allocation2 + $0x8] sm:$0xff] %v654_v18 }
0x126c   :  { %v913_v20 = vpop.f32.mrf.mxu2 }
0x1270   :  { %v890_v19 = vld [vmem:[#allocation2 + $0x8] sm:$0x3]  ;;  %v954_v44 = vld [vmem:[#allocation2 + $0xa] sm:$0x3]  ;;  %v1018_v7 = vld [vmem:[#allocation2 + $0xc] sm:$0x3] }
0x1271   :  { %v916_v22 = vadd.f32 %v913_v20, %v890_v19 }
0x1273   :  { %1342 = vtanh.f32 %v916_v22  ;;  %v1227_v23 = vmul.f32 -1.442695, %v916_v22 }
0x1275   :  { %1344 = vpow2.f32 %v1227_v23 }
0x1279   :  { %v1343_v21 = vpop.eup %1342 }
0x127a   :  { %939 = vrot.lane.b32.xlu0 %v1343_v21, %s1456_s1 }
0x127b   :  { %v1345_v24 = vpop.eup %1344 }
0x127c   :  { %v920_v25 = vadd.f32 1.0, %v1345_v24 }
0x127e   :  { %1346 = vrcp.f32 %v920_v25  ;;  %v932_v57 = vand.u32 2147483648, %v920_v25  ;;  %vm926_vm10 = vweird.f32 %v920_v25  ;;  %v930_v31 = vand.u32 2147483647, %v920_v25 }
0x1280   :  { %v933_v33 = vor.u32 1.1754944e-38, %v932_v57  ;;  %vm931_vm12 = vcmp.eq.f32.partialorder %v930_v31, 8.507059e+37 }
0x1284   :  { %v1347_v26 = vpop.eup %1346 }
0x1285   :  { %v922_v27 = vmul.f32 %v1347_v26, %v920_v25  ;;  %vm927_vm6 = vweird.f32 %v1347_v26 }
0x1286   :  { %vm928_vm11 = vmor %vm926_vm10, %vm927_vm6  ;;  %vm1179_vm10 = vcmask 33792  }
0x1287   :  { %v923_v28 = vsub.f32 1.0, %v922_v27 }
0x1289   :  { %v924_v29 = vmul.f32 %v1347_v26, %v923_v28 }
0x128b   :  { %v925_v30 = vadd.f32 %v1347_v26, %v924_v29 }
0x128d   :  { %v929_v32 = vsel %vm928_vm11, %v1347_v26, %v925_v30 }
0x128e   :  { %v934_v39 = vsel %vm931_vm12, %v933_v33, %v929_v32  ;;  %v1082_v32 = vld [vmem:[#allocation2 + $0xe] sm:$0x3] }
0x128f   :  { %v937_v41 = vmul.f32 %v934_v39, %v883_v8 }
0x12ec   :  { %v940_v38 = vpop.permute.xlu0 %939 }
0x12ed   :  { %v942_v40 = vmul.f32 %v940_v38, %v934_v39 }
0x12ef   :  { %944 = vrot.lane.b32.xlu1 %v942_v40, %s1457_s3 }
0x1361   :  { %v945_v34 = vpop.permute.xlu1 %944 }
0x1362   :  { %v947_v35 = vadd.f32 %v945_v34, %v937_v41 }
0x1364   :  { %1348 = vtanh.f32 %v947_v35 }
0x136a   :  { %v1349_v36 = vpop.eup %1348 }
0x136b   :  { %950 = vrot.lane.b32.xlu2 %v1349_v36, %s1456_s1 }
0x13c5   :  { %v951_v37 = vpop.permute.xlu2 %950 }
0x13c6   :  { %v953_v42 = vmul.f32 %v951_v37, %v934_v39 }
0x13c8   :  { %956 = vrot.lane.b32.xlu0 %v953_v42, %s1457_s3 }
0x143a   :  { %v957_v43 = vpop.permute.xlu0 %956 }
0x143b   :  { %1228 = vmatmul.msk.f32.vlgmr.msrb.gmra.mxu3 %vm151_vm7, %v957_v43 }
0x14be   :  { %v977_v45 = vpop.f32.mrf.mxu3 }
0x14bf   :  { %v980_v46 = vadd.f32 %v977_v45, %v954_v44 }
0x14c1   :  { %1350 = vtanh.f32 %v980_v46  ;;  %v1229_v48 = vmul.f32 -1.442695, %v980_v46 }
0x14c3   :  { %1352 = vpow2.f32 %v1229_v48 }
0x14c7   :  { %v1351_v47 = vpop.eup %1350 }
0x14c8   :  { %1003 = vrot.lane.b32.xlu1 %v1351_v47, %s1456_s1 }
0x14c9   :  { %v1353_v49 = vpop.eup %1352 }
0x14ca   :  { %v984_v50 = vadd.f32 1.0, %v1353_v49 }
0x14cc   :  { %1354 = vrcp.f32 %v984_v50  ;;  %v996_v56 = vand.u32 2147483648, %v984_v50  ;;  %vm990_vm14 = vweird.f32 %v984_v50  ;;  %v994_v58 = vand.u32 2147483647, %v984_v50 }
0x14ce   :  { %v997_v59 = vor.u32 1.1754944e-38, %v996_v56  ;;  %vm995_vm0 = vcmp.eq.f32.partialorder %v994_v58, 8.507059e+37  ;;  %v1148_v56 = vld [vmem:[%s1727_s7 + $0x10] sm:$0xff]  ;;  %v1147_v58 = vld [vmem:[%s1727_s7 + $0x8] sm:$0xff] }
0x14d2   :  { %v1355_v51 = vpop.eup %1354 }
0x14d3   :  { %v986_v52 = vmul.f32 %v1355_v51, %v984_v50  ;;  %vm991_vm13 = vweird.f32 %v1355_v51 }
0x14d4   :  { %vm992_vm15 = vmor %vm990_vm14, %vm991_vm13 }
0x14d5   :  { %v987_v53 = vsub.f32 1.0, %v986_v52 }
0x14d7   :  { %v988_v54 = vmul.f32 %v1355_v51, %v987_v53 }
0x14d9   :  { %v989_v55 = vadd.f32 %v1355_v51, %v988_v54 }
0x14db   :  { %v993_v2 = vsel %vm992_vm15, %v1355_v51, %v989_v55  ;;  %v1149_v55 = vld [vmem:[%s1727_s7 + $0x18] sm:$0xff] }
0x14dc   :  { %v998_v61 = vsel %vm995_vm0, %v997_v59, %v993_v2  ;;  %1171 = vmatpush.msra.mxu2 %v1149_v55  ;;  %v1146_v2 = vld [vmem:[%s1727_s7] sm:$0xff] }
0x14dd   :  { %v1001_v63 = vmul.f32 %v998_v61, %v947_v35 }
0x14de   :  { %1172 = vmatpush.msra.mxu2 %v1148_v56 }
0x14e0   :  { %1173 = vmatpush.msra.mxu2 %v1147_v58 }
0x14e2   :  { %1174 = vmatpush.msra.mxu2 %v1146_v2 }
0x153a   :  { %v1004_v60 = vpop.permute.xlu1 %1003 }
0x153b   :  { %v1006_v62 = vmul.f32 %v1004_v60, %v998_v61 }
0x153d   :  { %1008 = vrot.lane.b32.xlu2 %v1006_v62, %s1457_s3  ;;  %v1245_v62 = vld [vmem:[%s1728_s8] ss:$0 sm:$0xff] }
0x1597   :  { %v1009_v0 = vpop.permute.xlu2 %1008 }
0x1598   :  { %v1011_v1 = vadd.f32 %v1009_v0, %v1001_v63 }
0x159a   :  { %1356 = vtanh.f32 %v1011_v1 }
0x15a0   :  { %v1357_v3 = vpop.eup %1356 }
0x15a1   :  { %1014 = vrot.lane.b32.xlu0 %v1357_v3, %s1456_s1 }
0x1613   :  { %v1015_v4 = vpop.permute.xlu0 %1014 }
0x1614   :  { %v1017_v5 = vmul.f32 %v1015_v4, %v998_v61 }
0x1616   :  { %1020 = vrot.lane.b32.xlu1 %v1017_v5, %s1457_s3 }
0x1688   :  { %v1021_v6 = vpop.permute.xlu1 %1020 }
0x1689   :  { %1230 = vmatmul.msk.f32.vlgmr.msrb.gmra.mxu0 %vm151_vm7, %v1021_v6 }
0x1706   :  { %v1041_v8 = vpop.f32.mrf.mxu0 }
0x1707   :  { %v1044_v9 = vadd.f32 %v1041_v8, %v1018_v7 }
0x1709   :  { %1358 = vtanh.f32 %v1044_v9  ;;  %v1231_v11 = vmul.f32 -1.442695, %v1044_v9 }
0x170b   :  { %1360 = vpow2.f32 %v1231_v11 }
0x170f   :  { %v1359_v10 = vpop.eup %1358 }
0x1710   :  { %1067 = vrot.lane.b32.xlu2 %v1359_v10, %s1456_s1 }
0x1711   :  { %v1361_v12 = vpop.eup %1360 }
0x1712   :  { %v1048_v13 = vadd.f32 1.0, %v1361_v12 }
0x1714   :  { %1362 = vrcp.f32 %v1048_v13  ;;  %v1060_v19 = vand.u32 2147483648, %v1048_v13  ;;  %vm1054_vm3 = vweird.f32 %v1048_v13  ;;  %v1058_v20 = vand.u32 2147483647, %v1048_v13 }
0x1716   :  { %v1061_v21 = vor.u32 1.1754944e-38, %v1060_v19  ;;  %vm1059_vm1 = vcmp.eq.f32.partialorder %v1058_v20, 8.507059e+37 }
0x171a   :  { %v1363_v14 = vpop.eup %1362 }
0x171b   :  { %v1050_v15 = vmul.f32 %v1363_v14, %v1048_v13  ;;  %vm1055_vm2 = vweird.f32 %v1363_v14 }
0x171c   :  { %vm1056_vm4 = vmor %vm1054_vm3, %vm1055_vm2 }
0x171d   :  { %v1051_v16 = vsub.f32 1.0, %v1050_v15 }
0x171f   :  { %v1052_v17 = vmul.f32 %v1363_v14, %v1051_v16 }
0x1721   :  { %v1053_v18 = vadd.f32 %v1363_v14, %v1052_v17 }
0x1723   :  { %v1057_v22 = vsel %vm1056_vm4, %v1363_v14, %v1053_v18 }
0x1724   :  { %v1062_v24 = vsel %vm1059_vm1, %v1061_v21, %v1057_v22 }
0x1725   :  { %v1065_v26 = vmul.f32 %v1062_v24, %v1011_v1 }
0x176a   :  { %v1068_v23 = vpop.permute.xlu2 %1067 }
0x176b   :  { %v1070_v25 = vmul.f32 %v1068_v23, %v1062_v24 }
0x176d   :  { %1072 = vrot.lane.b32.xlu0 %v1070_v25, %s1457_s3 }
0x17df   :  { %v1073_v27 = vpop.permute.xlu0 %1072 }
0x17e0   :  { %v1075_v28 = vadd.f32 %v1073_v27, %v1065_v26 }
0x17e2   :  { %1364 = vtanh.f32 %v1075_v28 }
0x17e8   :  { %v1365_v29 = vpop.eup %1364 }
0x17e9   :  { %1078 = vrot.lane.b32.xlu1 %v1365_v29, %s1456_s1 }
0x185b   :  { %v1079_v30 = vpop.permute.xlu1 %1078 }
0x185c   :  { %v1081_v57 = vmul.f32 %v1079_v30, %v1062_v24 }
0x185e   :  { %1084 = vrot.lane.b32.xlu2 %v1081_v57, %s1457_s3 }
0x18b8   :  { %v1085_v31 = vpop.permute.xlu2 %1084 }
0x18b9   :  { %1232 = vmatmul.msk.f32.vlgmr.msrb.gmra.mxu1 %vm151_vm7, %v1085_v31 }
0x1936   :  { %v1105_v33 = vpop.f32.mrf.mxu1 }
0x1937   :  { %v1108_v38 = vadd.f32 %v1105_v33, %v1082_v32 }
0x1939   :  { %1366 = vtanh.f32 %v1108_v38  ;;  %v1233_v40 = vmul.f32 -1.442695, %v1108_v38 }
0x193b   :  { %1368 = vpow2.f32 %v1233_v40 }
0x193f   :  { %v1367_v39 = vpop.eup %1366 }
0x1940   :  { %1131 = vrot.lane.b32.xlu0 %v1367_v39, %s1456_s1 }
0x1941   :  { %v1369_v41 = vpop.eup %1368 }
0x1942   :  { %v1112_v34 = vadd.f32 1.0, %v1369_v41 }
0x1944   :  { %1370 = vrcp.f32 %v1112_v34  ;;  %v1124_v44 = vand.u32 2147483648, %v1112_v34  ;;  %vm1118_vm8 = vweird.f32 %v1112_v34  ;;  %v1122_v45 = vand.u32 2147483647, %v1112_v34 }
0x1946   :  { %v1125_v47 = vor.u32 1.1754944e-38, %v1124_v44  ;;  %vm1123_vm6 = vcmp.eq.f32.partialorder %v1122_v45, 8.507059e+37 }
0x194a   :  { %v1371_v35 = vpop.eup %1370 }
0x194b   :  { %v1114_v36 = vmul.f32 %v1371_v35, %v1112_v34  ;;  %vm1119_vm5 = vweird.f32 %v1371_v35 }
0x194c   :  { %vm1120_vm9 = vmor %vm1118_vm8, %vm1119_vm5 }
0x194d   :  { %v1115_v37 = vsub.f32 1.0, %v1114_v36 }
0x194f   :  { %v1116_v42 = vmul.f32 %v1371_v35, %v1115_v37 }
0x1951   :  { %v1117_v43 = vadd.f32 %v1371_v35, %v1116_v42 }
0x1953   :  { %v1121_v46 = vsel %vm1120_vm9, %v1371_v35, %v1117_v43 }
0x1954   :  { %v1126_v49 = vsel %vm1123_vm6, %v1125_v47, %v1121_v46 }
0x1955   :  { %v1129_v51 = vmul.f32 %v1126_v49, %v1075_v28 }
0x19b2   :  { %v1132_v48 = vpop.permute.xlu0 %1131 }
0x19b3   :  { %v1134_v50 = vmul.f32 %v1132_v48, %v1126_v49 }
0x19b5   :  { %1136 = vrot.lane.b32.xlu1 %v1134_v50, %s1457_s3 }
0x1a27   :  { %v1137_v52 = vpop.permute.xlu1 %1136 }
0x1a28   :  { %v1139_v53 = vadd.f32 %v1137_v52, %v1129_v51 }
0x1a2a   :  { %1372 = vtanh.f32 %v1139_v53 }
0x1a30   :  { %v1373_v54 = vpop.eup %1372 }
0x1a31   :  { %1142 = vrot.lane.b32.xlu2 %v1373_v54, %s1456_s1 }
0x1a8b   :  { %v1143_v59 = vpop.permute.xlu2 %1142 }
0x1a8c   :  { %v1145_v60 = vmul.f32 %v1143_v59, %v1126_v49 }
0x1a8e   :  { %1155 = vrot.lane.b32.xlu0 %v1145_v60, %s1457_s3 }
0x1b00   :  { %v1156_v61 = vpop.permute.xlu0 %1155 }
0x1b01   :  { %1234 = vmatmul.msk.f32.vlgmr.msra.gmra.mxu2 %vm151_vm7, %v1156_v61 }
0x1b84   :  { %v1176_v63 = vpop.f32.mrf.mxu2 }
0x1b85   :  { %v1177_v0 = vadd.f32 %v1245_v62, %v1176_v63 }
0x1b87   :  { %1180 = vst.msk [vmem:[#allocation9] sm:$0x3] %vm1179_vm10, %v1177_v0 }
0x1b88   :  { %1191 = dma.vmem_to_hbm [thread:$0]  %s1187_s23, 32, %s1189_s25, [#allocation6]  }
0x1b89   :  { %1450 = dma.done.wait [#allocation6], 32  }
0x1b8a   :  { %1451 = vsyncadd [#allocation6], 4294967264 }
0x1b8b   :  { %1196 = vsyncpa [#allocation5], 1 }
0x1b8c   :  { %1197 = vsyncpa [#allocation8], 1 }
0x1b8d   :  { %1198 = vsyncpa [#allocation6], 1 }

</bundles_post_ra>
